<compile_context>
chip_gen: v5e
topology: v5e:2x2
jax: 0.10.0
libtpu: 0.0.40
codegen_flags: <defaults>
</compile_context>

<pallas_src>
import functools

import jax
import jax.numpy as jnp
from jax.experimental import pallas as pl
from jax.experimental.pallas import tpu as pltpu


def _round_up(x, m):
    return ((x + m - 1) // m) * m


# ----------------------- fused 2-layer LSTM + FC kernel -----------------------
def _fused_lstm_fc_kernel(x_ref, wih1_ref, b1_ref, whh1_ref,
                          w2_ref, b2_ref, fcw_ref, fcb_ref,
                          out_ref,
                          xp_scr, hseq_scr,
                          h1_scr, c1_scr, h2_scr, c2_scr,
                          *, t_chunk, batch, hidden):
    """One grid step = one chunk of `t_chunk` timesteps.

    x_ref    : (t_chunk*batch, D_in)  time-major, batch padded to a multiple of 8
    wih1_ref : (D_in, 4H)   b1_ref : (1, 4H)     (b_ih1 + b_hh1)
    whh1_ref : (H, 4H)
    w2_ref   : (2H, 4H)     merged [W_ih2^T ; W_hh2^T],  b2_ref: (1, 4H)
    fcw_ref  : (H, OUT_PAD) fcb_ref: (1, OUT_PAD)        lane-dense head (OUT_PAD=128k)
    out_ref  : (t_chunk*batch, OUT_PAD)
    xp_scr   : VMEM (t_chunk*batch, 4H)  hoisted layer-1 input projection (per chunk)
    hseq_scr : VMEM (t_chunk*batch, H)   layer-2 hidden states (per chunk)
    h1/c1/h2/c2_scr : VMEM (batch, H)    recurrent state carried across chunks
    """
    H = hidden

    # Zero-initialize the carried state on the first chunk only.
    @pl.when(pl.program_id(0) == 0)
    def _init():
        h1_scr[...] = jnp.zeros_like(h1_scr)
        c1_scr[...] = jnp.zeros_like(c1_scr)
        h2_scr[...] = jnp.zeros_like(h2_scr)
        c2_scr[...] = jnp.zeros_like(c2_scr)

    # ---- Stage 1: hoisted input projection, one lane-dense matmul per chunk. ----
    xp_scr[...] = (
        jnp.dot(x_ref[...], wih1_ref[...], preferred_element_type=jnp.float32)
        + b1_ref[...]
    )

    # Loop-invariant weights loaded once per chunk.
    whh1 = whh1_ref[...]
    w2 = w2_ref[...]
    b2 = b2_ref[...]

    # Gate-select lane mask hoisted out of the time loop (g-gate lanes [2H, 3H)).
    lane = jax.lax.broadcasted_iota(jnp.int32, (batch, 4 * H), 1)
    is_g = (lane >= 2 * H) & (lane < 3 * H)

    def lstm_cell(gates, c):
        # PyTorch gate order i|f|g|o along lanes. Two full-vreg EUP launches plus a
        # VPU select instead of four quarter-vreg EUP ops on 32-lane sub-slices.
        act = jnp.where(is_g, jnp.tanh(gates), jax.nn.sigmoid(gates))
        i = act[:, 0 * H:1 * H]
        f = act[:, 1 * H:2 * H]
        g = act[:, 2 * H:3 * H]
        o = act[:, 3 * H:4 * H]
        c_new = f * c + i * g
        h_new = o * jnp.tanh(c_new)
        return h_new, c_new

    def step(t, carry):
        h1, c1, h2, c2 = carry
        row = pl.multiple_of(t * batch, batch)          # sublane-aligned offset

        # Layer 1: per-step critical-path work is only the recurrent matmul.
        g1 = xp_scr[pl.ds(row, batch), :] + jnp.dot(
            h1, whh1, preferred_element_type=jnp.float32)
        h1, c1 = lstm_cell(g1, c1)

        # Layer 2: single merged K=2H matmul (W_ih2 and W_hh2 stacked).
        h12 = jnp.concatenate([h1, h2], axis=-1)
        g2 = jnp.dot(h12, w2, preferred_element_type=jnp.float32) + b2
        h2, c2 = lstm_cell(g2, c2)

        hseq_scr[pl.ds(row, batch), :] = h2
        return (h1, c1, h2, c2)

    carry0 = (h1_scr[...], c1_scr[...], h2_scr[...], c2_scr[...])
    h1, c1, h2, c2 = jax.lax.fori_loop(
        0, t_chunk, step, carry0, unroll=min(t_chunk, 8))

    h1_scr[...] = h1
    c1_scr[...] = c1
    h2_scr[...] = h2
    c2_scr[...] = c2

    # ---- Stage 3: FC head for the whole chunk; lane-dense (128-wide) store. ----
    out_ref[...] = (
        jnp.dot(hseq_scr[...], fcw_ref[...], preferred_element_type=jnp.float32)
        + fcb_ref[...]
    )


# --------------------------------- Wrapper -------------------------------------
def lstm_module_forward(x, params, *, t_chunk=4):
    """x: (B, S, input_size) -> (B, S, num_output). Mirrors LSTM.forward."""
    assert len(params["lstm"]) == 2, "module fixes num_layers = 2"
    B, S, D = x.shape
    H = params["lstm"][0]["w_hh"].shape[1]
    out_dim = params["fc_w"].shape[0]

    B_pad = _round_up(B, 8)                 # sublane granule
    S_pad = _round_up(S, t_chunk)           # whole number of time chunks
    num_chunks = S_pad // t_chunk
    OUT_PAD = _round_up(max(out_dim, 128), 128)   # lane-dense output
    rows = t_chunk * B_pad

    # Pad batch/time; padded rows & timesteps compute garbage that is sliced off.
    x_p = jnp.pad(x, ((0, B_pad - B), (0, S_pad - S), (0, 0)))
    # Time-major, flattened so every VMEM slab is 2-D: row index = t*B_pad + b.
    # TODO(synk): fold this transpose into the chunked BlockSpec index_map once
    # S*B*D bytes are large enough for the extra HBM pass to matter.
    x_tm = jnp.transpose(x_p, (1, 0, 2)).reshape(S_pad * B_pad, D)

    l1, l2 = params["lstm"]
    wih1_t = jnp.transpose(l1["w_ih"])                                 # (D, 4H)
    whh1_t = jnp.transpose(l1["w_hh"])                                 # (H, 4H)
    b1 = (l1["b_ih"] + l1["b_hh"]).reshape(1, 4 * H)
    # Merged layer-2 weights: one K=2H recurrent matmul per timestep.
    w2 = jnp.concatenate(
        [jnp.transpose(l2["w_ih"]), jnp.transpose(l2["w_hh"])], axis=0)  # (2H, 4H)
    b2 = (l2["b_ih"] + l2["b_hh"]).reshape(1, 4 * H)
    # Lane-dense FC head: zero-pad the output dimension to 128 lanes.
    fcw_pad = jnp.zeros((H, OUT_PAD), jnp.float32).at[:, :out_dim].set(
        jnp.transpose(params["fc_w"]))
    fcb_pad = jnp.zeros((1, OUT_PAD), jnp.float32).at[:, :out_dim].set(
        params["fc_b"])

    # ---- Per-generation VMEM limit with headroom, plus a fit guard. ----
    f32 = 4
    est_bytes = (
        2 * rows * D * f32                                   # x chunk (double-buffered)
        + 2 * rows * OUT_PAD * f32                           # out chunk (double-buffered)
        + 2 * (D * 4 * H + H * 4 * H + 2 * H * 4 * H
               + H * OUT_PAD + 2 * 4 * H + OUT_PAD) * f32    # weights / biases
        + rows * 4 * H * f32                                 # xp_scr
        + rows * H * f32                                     # hseq_scr
        + 4 * B_pad * H * f32                                # carried h/c state
    )
    try:
        vmem_cap = int(pltpu.get_tpu_info().vmem_capacity_bytes)
    except Exception:
        vmem_cap = 64 * 1024 * 1024
    vmem_limit = min(int(0.75 * vmem_cap), 100 * 1024 * 1024)
    assert est_bytes + (2 << 20) <= vmem_limit, (
        f"time chunk does not fit VMEM (~{est_bytes} B needed, limit {vmem_limit} B);"
        " reduce t_chunk")

    kernel = functools.partial(
        _fused_lstm_fc_kernel, t_chunk=t_chunk, batch=B_pad, hidden=H)

    # TODO(synk): on v7x, when B_pad >= 16, add a leading "parallel" batch-half grid
    # axis (per-core carried state) to use the second TensorCore.
    out_flat = pl.pallas_call(
        kernel,
        out_shape=jax.ShapeDtypeStruct((S_pad * B_pad, OUT_PAD), jnp.float32),
        grid=(num_chunks,),
        in_specs=[
            pl.BlockSpec((rows, D), lambda c: (c, 0)),        # x (time chunk)
            pl.BlockSpec((D, 4 * H), lambda c: (0, 0)),       # W_ih1^T
            pl.BlockSpec((1, 4 * H), lambda c: (0, 0)),       # b1
            pl.BlockSpec((H, 4 * H), lambda c: (0, 0)),       # W_hh1^T
            pl.BlockSpec((2 * H, 4 * H), lambda c: (0, 0)),   # [W_ih2^T ; W_hh2^T]
            pl.BlockSpec((1, 4 * H), lambda c: (0, 0)),       # b2
            pl.BlockSpec((H, OUT_PAD), lambda c: (0, 0)),     # W_fc^T (lane-padded)
            pl.BlockSpec((1, OUT_PAD), lambda c: (0, 0)),     # b_fc (lane-padded)
        ],
        out_specs=pl.BlockSpec((rows, OUT_PAD), lambda c: (c, 0)),
        scratch_shapes=[
            pltpu.VMEM((rows, 4 * H), jnp.float32),   # hoisted x-projection (chunk)
            pltpu.VMEM((rows, H), jnp.float32),       # layer-2 hidden states (chunk)
            pltpu.VMEM((B_pad, H), jnp.float32),      # h1 carry
            pltpu.VMEM((B_pad, H), jnp.float32),      # c1 carry
            pltpu.VMEM((B_pad, H), jnp.float32),      # h2 carry
            pltpu.VMEM((B_pad, H), jnp.float32),      # c2 carry
        ],
        compiler_params=pltpu.CompilerParams(
            dimension_semantics=("arbitrary",),       # time chunks are sequential
            vmem_limit_bytes=vmem_limit,
        ),
    )(x_tm, wih1_t, b1, whh1_t, w2, b2, fcw_pad, fcb_pad)

    out_tm = out_flat.reshape(S_pad, B_pad, OUT_PAD)
    return jnp.transpose(out_tm, (1, 0, 2))[:B, :S, :out_dim]


# ------------------------------ Pure-JAX reference -----------------------------
def _ref_lstm_layer(x_tm, w_ih, w_hh, b_ih, b_hh):
    S, B, _ = x_tm.shape
    H = w_hh.shape[1]

    def step(carry, x_t):
        h, c = carry
        gates = x_t @ w_ih.T + h @ w_hh.T + b_ih + b_hh
        i = jax.nn.sigmoid(gates[:, 0 * H:1 * H])
        f = jax.nn.sigmoid(gates[:, 1 * H:2 * H])
        g = jnp.tanh(gates[:, 2 * H:3 * H])
        o = jax.nn.sigmoid(gates[:, 3 * H:4 * H])
        c_new = f * c + i * g
        h_new = o * jnp.tanh(c_new)
        return (h_new, c_new), h_new

    init = (jnp.zeros((B, H)), jnp.zeros((B, H)))
    _, hs = jax.lax.scan(step, init, x_tm)
    return hs


def _ref_forward(x, params):
    h = jnp.transpose(x, (1, 0, 2))
    for layer in params["lstm"]:
        h = _ref_lstm_layer(h, layer["w_ih"], layer["w_hh"],
                            layer["b_ih"], layer["b_hh"])
    out = h @ params["fc_w"].T + params["fc_b"]
    return jnp.transpose(out, (1, 0, 2))


# ----------------------------------- Main --------------------------------------
if __name__ == "__main__":
    # Small shapes implied by the module: input_size = 3*n_grid, num_output = 2*n_grid
    n_grid = 4
    input_size = 3 * n_grid      # 12
    num_output = 2 * n_grid      # 8
    hidden_size = 32
    num_layers = 2
    seq_length = 8
    batch = 2

    key = jax.random.PRNGKey(0)
    keys = jax.random.split(key, 1 + 4 * num_layers + 2)
    scale = 1.0 / jnp.sqrt(hidden_size)

    lstm_params = []
    k_idx = 1
    for layer in range(num_layers):
        d_in = input_size if layer == 0 else hidden_size
        w_ih = jax.random.uniform(keys[k_idx + 0], (4 * hidden_size, d_in),
                                  minval=-scale, maxval=scale, dtype=jnp.float32)
        w_hh = jax.random.uniform(keys[k_idx + 1], (4 * hidden_size, hidden_size),
                                  minval=-scale, maxval=scale, dtype=jnp.float32)
        b_ih = jax.random.uniform(keys[k_idx + 2], (4 * hidden_size,),
                                  minval=-scale, maxval=scale, dtype=jnp.float32)
        b_hh = jax.random.uniform(keys[k_idx + 3], (4 * hidden_size,),
                                  minval=-scale, maxval=scale, dtype=jnp.float32)
        lstm_params.append(dict(w_ih=w_ih, w_hh=w_hh, b_ih=b_ih, b_hh=b_hh))
        k_idx += 4

    fc_w = jax.random.uniform(keys[k_idx], (num_output, hidden_size),
                              minval=-scale, maxval=scale, dtype=jnp.float32)
    fc_b = jax.random.uniform(keys[k_idx + 1], (num_output,),
                              minval=-scale, maxval=scale, dtype=jnp.float32)

    params = dict(lstm=lstm_params, fc_w=fc_w, fc_b=fc_b)

    x = jax.random.normal(keys[0], (batch, seq_length, input_size), dtype=jnp.float32)

    out = lstm_module_forward(x, params)          # t_chunk=4 -> 2 chunks: exercises carry
    out = jax.block_until_ready(out)

    ref = _ref_forward(x, params)
    assert out.shape == (batch, seq_length, num_output)
    assert jnp.allclose(out, ref, atol=1e-5, rtol=1e-5), "mismatch vs. JAX reference"

    print("KERNEL_OK")
</pallas_src>

<mosaic_0001>
module attributes {stable_mosaic.version = 11 : i64} {
  func.func @_fused_lstm_fc_kernel(%arg0: i32, %arg1: memref<32x12xf32, #tpu.memory_space<vmem>>, %arg2: memref<12x128xf32, #tpu.memory_space<vmem>>, %arg3: memref<1x128xf32, #tpu.memory_space<vmem>>, %arg4: memref<32x128xf32, #tpu.memory_space<vmem>>, %arg5: memref<64x128xf32, #tpu.memory_space<vmem>>, %arg6: memref<1x128xf32, #tpu.memory_space<vmem>>, %arg7: memref<32x128xf32, #tpu.memory_space<vmem>>, %arg8: memref<1x128xf32, #tpu.memory_space<vmem>>, %arg9: memref<32x128xf32, #tpu.memory_space<vmem>>, %arg10: memref<32x128xf32, #tpu.memory_space<vmem>>, %arg11: memref<32x32xf32, #tpu.memory_space<vmem>>, %arg12: memref<8x32xf32, #tpu.memory_space<vmem>>, %arg13: memref<8x32xf32, #tpu.memory_space<vmem>>, %arg14: memref<8x32xf32, #tpu.memory_space<vmem>>, %arg15: memref<8x32xf32, #tpu.memory_space<vmem>>) attributes {dimension_semantics = [#tpu.dimension_semantics<arbitrary>], iteration_bounds = array<i64: 2>, scalar_prefetch = 0 : i64, scratch_operands = 6 : i64, tpu.core_type = #tpu.core_type<tc>, window_params = [{transform_indices = @transform_0, window_bounds = array<i64: 32, 12>}, {pipeline_mode = #tpu.pipeline_mode<synchronous>, transform_indices = @transform_1, window_bounds = array<i64: 12, 128>}, {pipeline_mode = #tpu.pipeline_mode<synchronous>, transform_indices = @transform_2, window_bounds = array<i64: 1, 128>}, {pipeline_mode = #tpu.pipeline_mode<synchronous>, transform_indices = @transform_3, window_bounds = array<i64: 32, 128>}, {pipeline_mode = #tpu.pipeline_mode<synchronous>, transform_indices = @transform_4, window_bounds = array<i64: 64, 128>}, {pipeline_mode = #tpu.pipeline_mode<synchronous>, transform_indices = @transform_5, window_bounds = array<i64: 1, 128>}, {pipeline_mode = #tpu.pipeline_mode<synchronous>, transform_indices = @transform_6, window_bounds = array<i64: 32, 128>}, {pipeline_mode = #tpu.pipeline_mode<synchronous>, transform_indices = @transform_7, window_bounds = array<i64: 1, 128>}, {transform_indices = @transform_8, window_bounds = array<i64: 32, 128>}]} {
    %c0_i32 = arith.constant 0 : i32
    %0 = arith.cmpi eq, %arg0, %c0_i32 : i32
    %1 = arith.extui %0 : i1 to i32
    %c0_i32_0 = arith.constant 0 : i32
    %2 = arith.cmpi ne, %1, %c0_i32_0 : i32
    scf.if %2 {
      %cst_67 = arith.constant 0.000000e+00 : f32
      %210 = vector.broadcast %cst_67 : f32 to vector<8x32xf32>
      %c0_68 = arith.constant 0 : index
      %c0_69 = arith.constant 0 : index
      %211 = vector.load %arg12[%c0_68, %c0_69] : memref<8x32xf32, #tpu.memory_space<vmem>>, vector<8x32xf32>
      tpu.vector_store %arg12[%c0_68, %c0_69], %210 {strides = array<i32>} : memref<8x32xf32, #tpu.memory_space<vmem>>, vector<8x32xf32>,
      %cst_70 = arith.constant 0.000000e+00 : f32
      %212 = vector.broadcast %cst_70 : f32 to vector<8x32xf32>
      %c0_71 = arith.constant 0 : index
      %c0_72 = arith.constant 0 : index
      %213 = vector.load %arg13[%c0_71, %c0_72] : memref<8x32xf32, #tpu.memory_space<vmem>>, vector<8x32xf32>
      tpu.vector_store %arg13[%c0_71, %c0_72], %212 {strides = array<i32>} : memref<8x32xf32, #tpu.memory_space<vmem>>, vector<8x32xf32>,
      %cst_73 = arith.constant 0.000000e+00 : f32
      %214 = vector.broadcast %cst_73 : f32 to vector<8x32xf32>
      %c0_74 = arith.constant 0 : index
      %c0_75 = arith.constant 0 : index
      %215 = vector.load %arg14[%c0_74, %c0_75] : memref<8x32xf32, #tpu.memory_space<vmem>>, vector<8x32xf32>
      tpu.vector_store %arg14[%c0_74, %c0_75], %214 {strides = array<i32>} : memref<8x32xf32, #tpu.memory_space<vmem>>, vector<8x32xf32>,
      %cst_76 = arith.constant 0.000000e+00 : f32
      %216 = vector.broadcast %cst_76 : f32 to vector<8x32xf32>
      %c0_77 = arith.constant 0 : index
      %c0_78 = arith.constant 0 : index
      %217 = vector.load %arg15[%c0_77, %c0_78] : memref<8x32xf32, #tpu.memory_space<vmem>>, vector<8x32xf32>
      tpu.vector_store %arg15[%c0_77, %c0_78], %216 {strides = array<i32>} : memref<8x32xf32, #tpu.memory_space<vmem>>, vector<8x32xf32>,
    } else {
    }
    %c0 = arith.constant 0 : index
    %c0_1 = arith.constant 0 : index
    %3 = vector.load %arg1[%c0, %c0_1] : memref<32x12xf32, #tpu.memory_space<vmem>>, vector<32x12xf32>
    %c0_2 = arith.constant 0 : index
    %c0_3 = arith.constant 0 : index
    %4 = vector.load %arg2[%c0_2, %c0_3] : memref<12x128xf32, #tpu.memory_space<vmem>>, vector<12x128xf32>
    %cst = arith.constant dense<0.000000e+00> : vector<32x128xf32>
    %5 = tpu.matmul %3, %4, %cst {dimension_numbers = #tpu.dot_dimension_numbers<[1], [0], [0], [1], [0, 0, 1, 1], [], []>} : vector<32x12xf32>, vector<12x128xf32>, vector<32x128xf32> -> vector<32x128xf32>
    %c0_4 = arith.constant 0 : index
    %c0_5 = arith.constant 0 : index
    %6 = vector.load %arg3[%c0_4, %c0_5] : memref<1x128xf32, #tpu.memory_space<vmem>>, vector<1x128xf32>
    %7 = vector.broadcast %6 : vector<1x128xf32> to vector<32x128xf32>
    %8 = arith.addf %5, %7 : vector<32x128xf32>
    %c0_6 = arith.constant 0 : index
    %c0_7 = arith.constant 0 : index
    %9 = vector.load %arg10[%c0_6, %c0_7] : memref<32x128xf32, #tpu.memory_space<vmem>>, vector<32x128xf32>
    tpu.vector_store %arg10[%c0_6, %c0_7], %8 {strides = array<i32>} : memref<32x128xf32, #tpu.memory_space<vmem>>, vector<32x128xf32>,
    %c0_8 = arith.constant 0 : index
    %c0_9 = arith.constant 0 : index
    %10 = vector.load %arg4[%c0_8, %c0_9] : memref<32x128xf32, #tpu.memory_space<vmem>>, vector<32x128xf32>
    %c0_10 = arith.constant 0 : index
    %c0_11 = arith.constant 0 : index
    %11 = vector.load %arg5[%c0_10, %c0_11] : memref<64x128xf32, #tpu.memory_space<vmem>>, vector<64x128xf32>
    %c0_12 = arith.constant 0 : index
    %c0_13 = arith.constant 0 : index
    %12 = vector.load %arg6[%c0_12, %c0_13] : memref<1x128xf32, #tpu.memory_space<vmem>>, vector<1x128xf32>
    %13 = tpu.iota {dimensions = array<i32: 1>} : vector<8x128xi32>
    %c64_i32 = arith.constant 64 : i32
    %14 = vector.broadcast %c64_i32 : i32 to vector<8x128xi32>
    %15 = arith.cmpi sge, %13, %14 : vector<8x128xi32>
    %c96_i32 = arith.constant 96 : i32
    %16 = vector.broadcast %c96_i32 : i32 to vector<8x128xi32>
    %17 = arith.cmpi slt, %13, %16 : vector<8x128xi32>
    %18 = arith.andi %15, %17 : vector<8x128xi1>
    %c0_14 = arith.constant 0 : index
    %c0_15 = arith.constant 0 : index
    %19 = vector.load %arg12[%c0_14, %c0_15] : memref<8x32xf32, #tpu.memory_space<vmem>>, vector<8x32xf32>
    %c0_16 = arith.constant 0 : index
    %c0_17 = arith.constant 0 : index
    %20 = vector.load %arg13[%c0_16, %c0_17] : memref<8x32xf32, #tpu.memory_space<vmem>>, vector<8x32xf32>
    %c0_18 = arith.constant 0 : index
    %c0_19 = arith.constant 0 : index
    %21 = vector.load %arg14[%c0_18, %c0_19] : memref<8x32xf32, #tpu.memory_space<vmem>>, vector<8x32xf32>
    %c0_20 = arith.constant 0 : index
    %c0_21 = arith.constant 0 : index
    %22 = vector.load %arg15[%c0_20, %c0_21] : memref<8x32xf32, #tpu.memory_space<vmem>>, vector<8x32xf32>
    %c0_i32_22 = arith.constant 0 : i32
    %c8_i32 = arith.constant 8 : i32
    %23 = arith.muli %c0_i32_22, %c8_i32 : i32
    %24 = tpu.assume_multiple %23, 8 : i32
    %25 = arith.index_cast %24 : i32 to index
    %c0_23 = arith.constant 0 : index
    %26 = vector.load %arg10[%25, %c0_23] : memref<32x128xf32, #tpu.memory_space<vmem>>, vector<8x128xf32>
    %cst_24 = arith.constant dense<0.000000e+00> : vector<8x128xf32>
    %27 = tpu.matmul %19, %10, %cst_24 {dimension_numbers = #tpu.dot_dimension_numbers<[1], [0], [0], [1], [0, 0, 1, 1], [], []>} : vector<8x32xf32>, vector<32x128xf32>, vector<8x128xf32> -> vector<8x128xf32>
    %28 = arith.addf %26, %27 : vector<8x128xf32>
    %29 = math.tanh %28 : vector<8x128xf32>
    %30 = arith.negf %28 : vector<8x128xf32>
    %31 = math.exp %30 : vector<8x128xf32>
    %cst_25 = arith.constant 1.000000e+00 : f32
    %32 = vector.broadcast %cst_25 : f32 to vector<8x128xf32>
    %33 = arith.addf %32, %31 : vector<8x128xf32>
    %34 = arith.divf %32, %33 : vector<8x128xf32>
    %35 = arith.select %18, %29, %34 : vector<8x128xi1>, vector<8x128xf32>
    %36 = vector.extract_strided_slice %35 {offsets = [0, 0], sizes = [8, 32], strides = [1, 1]} : vector<8x128xf32> to vector<8x32xf32>
    %37 = vector.extract_strided_slice %35 {offsets = [0, 32], sizes = [8, 32], strides = [1, 1]} : vector<8x128xf32> to vector<8x32xf32>
    %38 = vector.extract_strided_slice %35 {offsets = [0, 64], sizes = [8, 32], strides = [1, 1]} : vector<8x128xf32> to vector<8x32xf32>
    %39 = vector.extract_strided_slice %35 {offsets = [0, 96], sizes = [8, 32], strides = [1, 1]} : vector<8x128xf32> to vector<8x32xf32>
    %40 = arith.mulf %37, %20 : vector<8x32xf32>
    %41 = arith.mulf %36, %38 : vector<8x32xf32>
    %42 = arith.addf %40, %41 : vector<8x32xf32>
    %43 = math.tanh %42 : vector<8x32xf32>
    %44 = arith.mulf %39, %43 : vector<8x32xf32>
    %45 = tpu.concatenate %44, %21 in 1 : vector<8x32xf32>, vector<8x32xf32> -> vector<8x64xf32>
    %cst_26 = arith.constant dense<0.000000e+00> : vector<8x128xf32>
    %46 = tpu.matmul %45, %11, %cst_26 {dimension_numbers = #tpu.dot_dimension_numbers<[1], [0], [0], [1], [0, 0, 1, 1], [], []>} : vector<8x64xf32>, vector<64x128xf32>, vector<8x128xf32> -> vector<8x128xf32>
    %47 = vector.broadcast %12 : vector<1x128xf32> to vector<8x128xf32>
    %48 = arith.addf %46, %47 : vector<8x128xf32>
    %49 = math.tanh %48 : vector<8x128xf32>
    %50 = arith.negf %48 : vector<8x128xf32>
    %51 = math.exp %50 : vector<8x128xf32>
    %cst_27 = arith.constant 1.000000e+00 : f32
    %52 = vector.broadcast %cst_27 : f32 to vector<8x128xf32>
    %53 = arith.addf %52, %51 : vector<8x128xf32>
    %54 = arith.divf %52, %53 : vector<8x128xf32>
    %55 = arith.select %18, %49, %54 : vector<8x128xi1>, vector<8x128xf32>
    %56 = vector.extract_strided_slice %55 {offsets = [0, 0], sizes = [8, 32], strides = [1, 1]} : vector<8x128xf32> to vector<8x32xf32>
    %57 = vector.extract_strided_slice %55 {offsets = [0, 32], sizes = [8, 32], strides = [1, 1]} : vector<8x128xf32> to vector<8x32xf32>
    %58 = vector.extract_strided_slice %55 {offsets = [0, 64], sizes = [8, 32], strides = [1, 1]} : vector<8x128xf32> to vector<8x32xf32>
    %59 = vector.extract_strided_slice %55 {offsets = [0, 96], sizes = [8, 32], strides = [1, 1]} : vector<8x128xf32> to vector<8x32xf32>
    %60 = arith.mulf %57, %22 : vector<8x32xf32>
    %61 = arith.mulf %56, %58 : vector<8x32xf32>
    %62 = arith.addf %60, %61 : vector<8x32xf32>
    %63 = math.tanh %62 : vector<8x32xf32>
    %64 = arith.mulf %59, %63 : vector<8x32xf32>
    %65 = arith.index_cast %24 : i32 to index
    %c0_28 = arith.constant 0 : index
    %66 = vector.load %arg11[%65, %c0_28] : memref<32x32xf32, #tpu.memory_space<vmem>>, vector<8x32xf32>
    tpu.vector_store %arg11[%65, %c0_28], %64 {strides = array<i32>} : memref<32x32xf32, #tpu.memory_space<vmem>>, vector<8x32xf32>,
    %c1_i32 = arith.constant 1 : i32
    %c8_i32_29 = arith.constant 8 : i32
    %67 = arith.muli %c1_i32, %c8_i32_29 : i32
    %68 = tpu.assume_multiple %67, 8 : i32
    %69 = arith.index_cast %68 : i32 to index
    %c0_30 = arith.constant 0 : index
    %70 = vector.load %arg10[%69, %c0_30] : memref<32x128xf32, #tpu.memory_space<vmem>>, vector<8x128xf32>
    %cst_31 = arith.constant dense<0.000000e+00> : vector<8x128xf32>
    %71 = tpu.matmul %44, %10, %cst_31 {dimension_numbers = #tpu.dot_dimension_numbers<[1], [0], [0], [1], [0, 0, 1, 1], [], []>} : vector<8x32xf32>, vector<32x128xf32>, vector<8x128xf32> -> vector<8x128xf32>
    %72 = arith.addf %70, %71 : vector<8x128xf32>
    %73 = math.tanh %72 : vector<8x128xf32>
    %74 = arith.negf %72 : vector<8x128xf32>
    %75 = math.exp %74 : vector<8x128xf32>
    %cst_32 = arith.constant 1.000000e+00 : f32
    %76 = vector.broadcast %cst_32 : f32 to vector<8x128xf32>
    %77 = arith.addf %76, %75 : vector<8x128xf32>
    %78 = arith.divf %76, %77 : vector<8x128xf32>
    %79 = arith.select %18, %73, %78 : vector<8x128xi1>, vector<8x128xf32>
    %80 = vector.extract_strided_slice %79 {offsets = [0, 0], sizes = [8, 32], strides = [1, 1]} : vector<8x128xf32> to vector<8x32xf32>
    %81 = vector.extract_strided_slice %79 {offsets = [0, 32], sizes = [8, 32], strides = [1, 1]} : vector<8x128xf32> to vector<8x32xf32>
    %82 = vector.extract_strided_slice %79 {offsets = [0, 64], sizes = [8, 32], strides = [1, 1]} : vector<8x128xf32> to vector<8x32xf32>
    %83 = vector.extract_strided_slice %79 {offsets = [0, 96], sizes = [8, 32], strides = [1, 1]} : vector<8x128xf32> to vector<8x32xf32>
    %84 = arith.mulf %81, %42 : vector<8x32xf32>
    %85 = arith.mulf %80, %82 : vector<8x32xf32>
    %86 = arith.addf %84, %85 : vector<8x32xf32>
    %87 = math.tanh %86 : vector<8x32xf32>
    %88 = arith.mulf %83, %87 : vector<8x32xf32>
    %89 = tpu.concatenate %88, %64 in 1 : vector<8x32xf32>, vector<8x32xf32> -> vector<8x64xf32>
    %cst_33 = arith.constant dense<0.000000e+00> : vector<8x128xf32>
    %90 = tpu.matmul %89, %11, %cst_33 {dimension_numbers = #tpu.dot_dimension_numbers<[1], [0], [0], [1], [0, 0, 1, 1], [], []>} : vector<8x64xf32>, vector<64x128xf32>, vector<8x128xf32> -> vector<8x128xf32>
    %91 = vector.broadcast %12 : vector<1x128xf32> to vector<8x128xf32>
    %92 = arith.addf %90, %91 : vector<8x128xf32>
    %93 = math.tanh %92 : vector<8x128xf32>
    %94 = arith.negf %92 : vector<8x128xf32>
    %95 = math.exp %94 : vector<8x128xf32>
    %cst_34 = arith.constant 1.000000e+00 : f32
    %96 = vector.broadcast %cst_34 : f32 to vector<8x128xf32>
    %97 = arith.addf %96, %95 : vector<8x128xf32>
    %98 = arith.divf %96, %97 : vector<8x128xf32>
    %99 = arith.select %18, %93, %98 : vector<8x128xi1>, vector<8x128xf32>
    %100 = vector.extract_strided_slice %99 {offsets = [0, 0], sizes = [8, 32], strides = [1, 1]} : vector<8x128xf32> to vector<8x32xf32>
    %101 = vector.extract_strided_slice %99 {offsets = [0, 32], sizes = [8, 32], strides = [1, 1]} : vector<8x128xf32> to vector<8x32xf32>
    %102 = vector.extract_strided_slice %99 {offsets = [0, 64], sizes = [8, 32], strides = [1, 1]} : vector<8x128xf32> to vector<8x32xf32>
    %103 = vector.extract_strided_slice %99 {offsets = [0, 96], sizes = [8, 32], strides = [1, 1]} : vector<8x128xf32> to vector<8x32xf32>
    %104 = arith.mulf %101, %62 : vector<8x32xf32>
    %105 = arith.mulf %100, %102 : vector<8x32xf32>
    %106 = arith.addf %104, %105 : vector<8x32xf32>
    %107 = math.tanh %106 : vector<8x32xf32>
    %108 = arith.mulf %103, %107 : vector<8x32xf32>
    %109 = arith.index_cast %68 : i32 to index
    %c0_35 = arith.constant 0 : index
    %110 = vector.load %arg11[%109, %c0_35] : memref<32x32xf32, #tpu.memory_space<vmem>>, vector<8x32xf32>
    tpu.vector_store %arg11[%109, %c0_35], %108 {strides = array<i32>} : memref<32x32xf32, #tpu.memory_space<vmem>>, vector<8x32xf32>,
    %c2_i32 = arith.constant 2 : i32
    %c8_i32_36 = arith.constant 8 : i32
    %111 = arith.muli %c2_i32, %c8_i32_36 : i32
    %112 = tpu.assume_multiple %111, 8 : i32
    %113 = arith.index_cast %112 : i32 to index
    %c0_37 = arith.constant 0 : index
    %114 = vector.load %arg10[%113, %c0_37] : memref<32x128xf32, #tpu.memory_space<vmem>>, vector<8x128xf32>
    %cst_38 = arith.constant dense<0.000000e+00> : vector<8x128xf32>
    %115 = tpu.matmul %88, %10, %cst_38 {dimension_numbers = #tpu.dot_dimension_numbers<[1], [0], [0], [1], [0, 0, 1, 1], [], []>} : vector<8x32xf32>, vector<32x128xf32>, vector<8x128xf32> -> vector<8x128xf32>
    %116 = arith.addf %114, %115 : vector<8x128xf32>
    %117 = math.tanh %116 : vector<8x128xf32>
    %118 = arith.negf %116 : vector<8x128xf32>
    %119 = math.exp %118 : vector<8x128xf32>
    %cst_39 = arith.constant 1.000000e+00 : f32
    %120 = vector.broadcast %cst_39 : f32 to vector<8x128xf32>
    %121 = arith.addf %120, %119 : vector<8x128xf32>
    %122 = arith.divf %120, %121 : vector<8x128xf32>
    %123 = arith.select %18, %117, %122 : vector<8x128xi1>, vector<8x128xf32>
    %124 = vector.extract_strided_slice %123 {offsets = [0, 0], sizes = [8, 32], strides = [1, 1]} : vector<8x128xf32> to vector<8x32xf32>
    %125 = vector.extract_strided_slice %123 {offsets = [0, 32], sizes = [8, 32], strides = [1, 1]} : vector<8x128xf32> to vector<8x32xf32>
    %126 = vector.extract_strided_slice %123 {offsets = [0, 64], sizes = [8, 32], strides = [1, 1]} : vector<8x128xf32> to vector<8x32xf32>
    %127 = vector.extract_strided_slice %123 {offsets = [0, 96], sizes = [8, 32], strides = [1, 1]} : vector<8x128xf32> to vector<8x32xf32>
    %128 = arith.mulf %125, %86 : vector<8x32xf32>
    %129 = arith.mulf %124, %126 : vector<8x32xf32>
    %130 = arith.addf %128, %129 : vector<8x32xf32>
    %131 = math.tanh %130 : vector<8x32xf32>
    %132 = arith.mulf %127, %131 : vector<8x32xf32>
    %133 = tpu.concatenate %132, %108 in 1 : vector<8x32xf32>, vector<8x32xf32> -> vector<8x64xf32>
    %cst_40 = arith.constant dense<0.000000e+00> : vector<8x128xf32>
    %134 = tpu.matmul %133, %11, %cst_40 {dimension_numbers = #tpu.dot_dimension_numbers<[1], [0], [0], [1], [0, 0, 1, 1], [], []>} : vector<8x64xf32>, vector<64x128xf32>, vector<8x128xf32> -> vector<8x128xf32>
    %135 = vector.broadcast %12 : vector<1x128xf32> to vector<8x128xf32>
    %136 = arith.addf %134, %135 : vector<8x128xf32>
    %137 = math.tanh %136 : vector<8x128xf32>
    %138 = arith.negf %136 : vector<8x128xf32>
    %139 = math.exp %138 : vector<8x128xf32>
    %cst_41 = arith.constant 1.000000e+00 : f32
    %140 = vector.broadcast %cst_41 : f32 to vector<8x128xf32>
    %141 = arith.addf %140, %139 : vector<8x128xf32>
    %142 = arith.divf %140, %141 : vector<8x128xf32>
    %143 = arith.select %18, %137, %142 : vector<8x128xi1>, vector<8x128xf32>
    %144 = vector.extract_strided_slice %143 {offsets = [0, 0], sizes = [8, 32], strides = [1, 1]} : vector<8x128xf32> to vector<8x32xf32>
    %145 = vector.extract_strided_slice %143 {offsets = [0, 32], sizes = [8, 32], strides = [1, 1]} : vector<8x128xf32> to vector<8x32xf32>
    %146 = vector.extract_strided_slice %143 {offsets = [0, 64], sizes = [8, 32], strides = [1, 1]} : vector<8x128xf32> to vector<8x32xf32>
    %147 = vector.extract_strided_slice %143 {offsets = [0, 96], sizes = [8, 32], strides = [1, 1]} : vector<8x128xf32> to vector<8x32xf32>
    %148 = arith.mulf %145, %106 : vector<8x32xf32>
    %149 = arith.mulf %144, %146 : vector<8x32xf32>
    %150 = arith.addf %148, %149 : vector<8x32xf32>
    %151 = math.tanh %150 : vector<8x32xf32>
    %152 = arith.mulf %147, %151 : vector<8x32xf32>
    %153 = arith.index_cast %112 : i32 to index
    %c0_42 = arith.constant 0 : index
    %154 = vector.load %arg11[%153, %c0_42] : memref<32x32xf32, #tpu.memory_space<vmem>>, vector<8x32xf32>
    tpu.vector_store %arg11[%153, %c0_42], %152 {strides = array<i32>} : memref<32x32xf32, #tpu.memory_space<vmem>>, vector<8x32xf32>,
    %c3_i32 = arith.constant 3 : i32
    %c8_i32_43 = arith.constant 8 : i32
    %155 = arith.muli %c3_i32, %c8_i32_43 : i32
    %156 = tpu.assume_multiple %155, 8 : i32
    %157 = arith.index_cast %156 : i32 to index
    %c0_44 = arith.constant 0 : index
    %158 = vector.load %arg10[%157, %c0_44] : memref<32x128xf32, #tpu.memory_space<vmem>>, vector<8x128xf32>
    %cst_45 = arith.constant dense<0.000000e+00> : vector<8x128xf32>
    %159 = tpu.matmul %132, %10, %cst_45 {dimension_numbers = #tpu.dot_dimension_numbers<[1], [0], [0], [1], [0, 0, 1, 1], [], []>} : vector<8x32xf32>, vector<32x128xf32>, vector<8x128xf32> -> vector<8x128xf32>
    %160 = arith.addf %158, %159 : vector<8x128xf32>
    %161 = math.tanh %160 : vector<8x128xf32>
    %162 = arith.negf %160 : vector<8x128xf32>
    %163 = math.exp %162 : vector<8x128xf32>
    %cst_46 = arith.constant 1.000000e+00 : f32
    %164 = vector.broadcast %cst_46 : f32 to vector<8x128xf32>
    %165 = arith.addf %164, %163 : vector<8x128xf32>
    %166 = arith.divf %164, %165 : vector<8x128xf32>
    %167 = arith.select %18, %161, %166 : vector<8x128xi1>, vector<8x128xf32>
    %168 = vector.extract_strided_slice %167 {offsets = [0, 0], sizes = [8, 32], strides = [1, 1]} : vector<8x128xf32> to vector<8x32xf32>
    %169 = vector.extract_strided_slice %167 {offsets = [0, 32], sizes = [8, 32], strides = [1, 1]} : vector<8x128xf32> to vector<8x32xf32>
    %170 = vector.extract_strided_slice %167 {offsets = [0, 64], sizes = [8, 32], strides = [1, 1]} : vector<8x128xf32> to vector<8x32xf32>
    %171 = vector.extract_strided_slice %167 {offsets = [0, 96], sizes = [8, 32], strides = [1, 1]} : vector<8x128xf32> to vector<8x32xf32>
    %172 = arith.mulf %169, %130 : vector<8x32xf32>
    %173 = arith.mulf %168, %170 : vector<8x32xf32>
    %174 = arith.addf %172, %173 : vector<8x32xf32>
    %175 = math.tanh %174 : vector<8x32xf32>
    %176 = arith.mulf %171, %175 : vector<8x32xf32>
    %177 = tpu.concatenate %176, %152 in 1 : vector<8x32xf32>, vector<8x32xf32> -> vector<8x64xf32>
    %cst_47 = arith.constant dense<0.000000e+00> : vector<8x128xf32>
    %178 = tpu.matmul %177, %11, %cst_47 {dimension_numbers = #tpu.dot_dimension_numbers<[1], [0], [0], [1], [0, 0, 1, 1], [], []>} : vector<8x64xf32>, vector<64x128xf32>, vector<8x128xf32> -> vector<8x128xf32>
    %179 = vector.broadcast %12 : vector<1x128xf32> to vector<8x128xf32>
    %180 = arith.addf %178, %179 : vector<8x128xf32>
    %181 = math.tanh %180 : vector<8x128xf32>
    %182 = arith.negf %180 : vector<8x128xf32>
    %183 = math.exp %182 : vector<8x128xf32>
    %cst_48 = arith.constant 1.000000e+00 : f32
    %184 = vector.broadcast %cst_48 : f32 to vector<8x128xf32>
    %185 = arith.addf %184, %183 : vector<8x128xf32>
    %186 = arith.divf %184, %185 : vector<8x128xf32>
    %187 = arith.select %18, %181, %186 : vector<8x128xi1>, vector<8x128xf32>
    %188 = vector.extract_strided_slice %187 {offsets = [0, 0], sizes = [8, 32], strides = [1, 1]} : vector<8x128xf32> to vector<8x32xf32>
    %189 = vector.extract_strided_slice %187 {offsets = [0, 32], sizes = [8, 32], strides = [1, 1]} : vector<8x128xf32> to vector<8x32xf32>
    %190 = vector.extract_strided_slice %187 {offsets = [0, 64], sizes = [8, 32], strides = [1, 1]} : vector<8x128xf32> to vector<8x32xf32>
    %191 = vector.extract_strided_slice %187 {offsets = [0, 96], sizes = [8, 32], strides = [1, 1]} : vector<8x128xf32> to vector<8x32xf32>
    %192 = arith.mulf %189, %150 : vector<8x32xf32>
    %193 = arith.mulf %188, %190 : vector<8x32xf32>
    %194 = arith.addf %192, %193 : vector<8x32xf32>
    %195 = math.tanh %194 : vector<8x32xf32>
    %196 = arith.mulf %191, %195 : vector<8x32xf32>
    %197 = arith.index_cast %156 : i32 to index
    %c0_49 = arith.constant 0 : index
    %198 = vector.load %arg11[%197, %c0_49] : memref<32x32xf32, #tpu.memory_space<vmem>>, vector<8x32xf32>
    tpu.vector_store %arg11[%197, %c0_49], %196 {strides = array<i32>} : memref<32x32xf32, #tpu.memory_space<vmem>>, vector<8x32xf32>,
    %c4_i32 = arith.constant 4 : i32
    %c0_50 = arith.constant 0 : index
    %c0_51 = arith.constant 0 : index
    %199 = vector.load %arg12[%c0_50, %c0_51] : memref<8x32xf32, #tpu.memory_space<vmem>>, vector<8x32xf32>
    tpu.vector_store %arg12[%c0_50, %c0_51], %176 {strides = array<i32>} : memref<8x32xf32, #tpu.memory_space<vmem>>, vector<8x32xf32>,
    %c0_52 = arith.constant 0 : index
    %c0_53 = arith.constant 0 : index
    %200 = vector.load %arg13[%c0_52, %c0_53] : memref<8x32xf32, #tpu.memory_space<vmem>>, vector<8x32xf32>
    tpu.vector_store %arg13[%c0_52, %c0_53], %174 {strides = array<i32>} : memref<8x32xf32, #tpu.memory_space<vmem>>, vector<8x32xf32>,
    %c0_54 = arith.constant 0 : index
    %c0_55 = arith.constant 0 : index
    %201 = vector.load %arg14[%c0_54, %c0_55] : memref<8x32xf32, #tpu.memory_space<vmem>>, vector<8x32xf32>
    tpu.vector_store %arg14[%c0_54, %c0_55], %196 {strides = array<i32>} : memref<8x32xf32, #tpu.memory_space<vmem>>, vector<8x32xf32>,
    %c0_56 = arith.constant 0 : index
    %c0_57 = arith.constant 0 : index
    %202 = vector.load %arg15[%c0_56, %c0_57] : memref<8x32xf32, #tpu.memory_space<vmem>>, vector<8x32xf32>
    tpu.vector_store %arg15[%c0_56, %c0_57], %194 {strides = array<i32>} : memref<8x32xf32, #tpu.memory_space<vmem>>, vector<8x32xf32>,
    %c0_58 = arith.constant 0 : index
    %c0_59 = arith.constant 0 : index
    %203 = vector.load %arg11[%c0_58, %c0_59] : memref<32x32xf32, #tpu.memory_space<vmem>>, vector<32x32xf32>
    %c0_60 = arith.constant 0 : index
    %c0_61 = arith.constant 0 : index
    %204 = vector.load %arg7[%c0_60, %c0_61] : memref<32x128xf32, #tpu.memory_space<vmem>>, vector<32x128xf32>
    %cst_62 = arith.constant dense<0.000000e+00> : vector<32x128xf32>
    %205 = tpu.matmul %203, %204, %cst_62 {dimension_numbers = #tpu.dot_dimension_numbers<[1], [0], [0], [1], [0, 0, 1, 1], [], []>} : vector<32x32xf32>, vector<32x128xf32>, vector<32x128xf32> -> vector<32x128xf32>
    %c0_63 = arith.constant 0 : index
    %c0_64 = arith.constant 0 : index
    %206 = vector.load %arg8[%c0_63, %c0_64] : memref<1x128xf32, #tpu.memory_space<vmem>>, vector<1x128xf32>
    %207 = vector.broadcast %206 : vector<1x128xf32> to vector<32x128xf32>
    %208 = arith.addf %205, %207 : vector<32x128xf32>
    %c0_65 = arith.constant 0 : index
    %c0_66 = arith.constant 0 : index
    %209 = vector.load %arg9[%c0_65, %c0_66] : memref<32x128xf32, #tpu.memory_space<vmem>>, vector<32x128xf32>
    tpu.vector_store %arg9[%c0_65, %c0_66], %208 {strides = array<i32>} : memref<32x128xf32, #tpu.memory_space<vmem>>, vector<32x128xf32>,
    return
  }
  func.func @transform_0(%arg0: i32) -> (i32, i32) {
    %c0_i32 = arith.constant 0 : i32
    %c0_i32_0 = arith.constant 0 : i32
    return %arg0, %c0_i32 : i32, i32
  }
  func.func @transform_1(%arg0: i32) -> (i32, i32) {
    %c0_i32 = arith.constant 0 : i32
    %c0_i32_0 = arith.constant 0 : i32
    %c0_i32_1 = arith.constant 0 : i32
    return %c0_i32, %c0_i32_0 : i32, i32
  }
  func.func @transform_2(%arg0: i32) -> (i32, i32) {
    %c0_i32 = arith.constant 0 : i32
    %c0_i32_0 = arith.constant 0 : i32
    %c0_i32_1 = arith.constant 0 : i32
    return %c0_i32, %c0_i32_0 : i32, i32
  }
  func.func @transform_3(%arg0: i32) -> (i32, i32) {
    %c0_i32 = arith.constant 0 : i32
    %c0_i32_0 = arith.constant 0 : i32
    %c0_i32_1 = arith.constant 0 : i32
    return %c0_i32, %c0_i32_0 : i32, i32
  }
  func.func @transform_4(%arg0: i32) -> (i32, i32) {
    %c0_i32 = arith.constant 0 : i32
    %c0_i32_0 = arith.constant 0 : i32
    %c0_i32_1 = arith.constant 0 : i32
    return %c0_i32, %c0_i32_0 : i32, i32
  }
  func.func @transform_5(%arg0: i32) -> (i32, i32) {
    %c0_i32 = arith.constant 0 : i32
    %c0_i32_0 = arith.constant 0 : i32
    %c0_i32_1 = arith.constant 0 : i32
    return %c0_i32, %c0_i32_0 : i32, i32
  }
  func.func @transform_6(%arg0: i32) -> (i32, i32) {
    %c0_i32 = arith.constant 0 : i32
    %c0_i32_0 = arith.constant 0 : i32
    %c0_i32_1 = arith.constant 0 : i32
    return %c0_i32, %c0_i32_0 : i32, i32
  }
  func.func @transform_7(%arg0: i32) -> (i32, i32) {
    %c0_i32 = arith.constant 0 : i32
    %c0_i32_0 = arith.constant 0 : i32
    %c0_i32_1 = arith.constant 0 : i32
    return %c0_i32, %c0_i32_0 : i32, i32
  }
  func.func @transform_8(%arg0: i32) -> (i32, i32) {
    %c0_i32 = arith.constant 0 : i32
    %c0_i32_0 = arith.constant 0 : i32
    return %arg0, %c0_i32 : i32, i32
  }
}

</mosaic_0001>

<bundles_post_ra>
// kernel: tpu_custom_call.1
= control target key start
LH: loop header
LB: loop body
LE: loop exit
PB: predicated region body
PF: predicated region fallthrough
CT: control target
= control target key end

     0   :  { %13 = vsyncpa [#allocation9], 0  ;;  %s1853_s0 = inlined_call_operand.vmem [shape: f32[64,12], index: 0, kind: input, shape index: {}]   ;;  %s1854_s1 = inlined_call_operand.vmem [shape: f32[12,128], index: 1, kind: input, shape index: {}]   ;;  %s1855_s2 = inlined_call_operand.vmem [shape: f32[1,128], index: 2, kind: input, shape index: {}]   ;;  %s1856_s3 = inlined_call_operand.hbm [shape: f32[32,128], index: 3, kind: input, shape index: {}]   ;;  %s1857_s4 = inlined_call_operand.vmem [shape: f32[64,128], index: 4, kind: input, shape index: {}]   ;;  %s1858_s5 = inlined_call_operand.vmem [shape: f32[1,128], index: 5, kind: input, shape index: {}]   ;;  %s1859_s6 = inlined_call_operand.hbm [shape: f32[32,128], index: 6, kind: input, shape index: {}]   ;;  %s1860_s7 = inlined_call_operand.vmem [shape: f32[1,128], index: 7, kind: input, shape index: {}]   ;;  %s1861_s8 = inlined_call_operand.hbm [shape: f32[64,128], index: 8, kind: output, shape index: {}]  }
   0x1   :  { %14 = vsyncpa [#allocation12], 0 }
   0x2   :  { %15 = vsyncpa [#allocation10], 0 }
   0x3   :  { %17 = vsyncpa [#allocation10 + $0x1], 0  ;;  %s1531_s27 = smov 0   ;;  %s1533_s28 = smov 0  }
   0x4   :  { %s1535_s29 = smov 0   ;;  %s1537_s30 = smov 0  }
   0x5 LB: > { %s1552_s9 = sadd.s32 4294967295, %s1474_s30   ;;  %s1166_s10 = sadd.s32 4294967294, %s1474_s30   ;;  %s1474_s30 = sphi %s1537_s30, %s1870_s30   ;;  %s1470_s29 = sphi %s1535_s29, %s1869_s29   ;;  %s1466_s28 = sphi %s1533_s28, %s1868_s28   ;;  %s1462_s27 = sphi %s1531_s27, %s1867_s27  }
   0x6   : > { %s1556_s11 = sadd.s32 1, %s1474_s30   ;;  %s203_s12 = sadd.s32 1, %s1470_s29 }
   0x7   : > { %s200_s13 = ssub.s32 %s1474_s30, %s1556_s11  ;;  %p213_p0 = scmp.ne.s32.totalorder %s1470_s29, %s1466_s28 }
   0x8   : > { %p201_p1 = scmp.eq.s32.totalorder %s200_s13, 0  ;;  %p214_p2 = scmp.eq.s32.totalorder %s1552_s9, 1 }
   0x9   : > { %p219_p3 = scmp.ne.s32.totalorder %s1466_s28, %s1462_s27  ;;  %p220_p4 = scmp.eq.s32.totalorder %s1166_s10, 1 }
   0xa   : > { %s1567_s14 = scalar_select %p201_p1, %s1470_s29, %s203_s12  }
   0xb   : > { %p1569_p5 = por %p214_p2, %p213_p0  ;;  %p1573_p6 = por %p220_p4, %p219_p3 }
   0xc   : > { %p1167_p7 = scmp.ge.s32.totalorder %s1474_s30, 1  ;;  %p227_p8 = scmp.lt.s32.totalorder %s1474_s30, 3 }
   0xd   : > { %p1168_p9 = scmp.ne.s32.totalorder %s1552_s9, 0  ;;  %p1230_p10 = scmp.eq.s32.totalorder %s1552_s9, 0 }
   0xe   : > { %p1581_p11 = pnand %p1167_p7, %p227_p8  ;;  %s244_s20 = sshll.u32 %s1856_s3, 4  ;;  %s245_s20 = int_to_ptr.hbm [resolvable:$true] %s244_s20 }
   0xf   : > { %s1476_s21 = smov [#allocation8]   ;;  %s264_s25 = sshll.u32 %s1859_s6, 4  ;;  %s265_s25 = int_to_ptr.hbm [resolvable:$true] %s264_s25 }
  0x10   : > { %p1219_p12 = pneg %p1581_p11  ;;  %s246_s22 = sshll.u32 %s1476_s21, 4  ;;  %s247_s22 = int_to_ptr.vmem [resolvable:$true] %s246_s22 }
  0x11   : > { %s1477_s26 = smov 128   ;;  %s1478_s10 = smov 8  }
  0x12   : > { %p1220_p13 = pnand %p1230_p10, %p1219_p12  ;;  %s1479_s12 = smov [#allocation11]  }
  0x13   : > { %s266_s13 = sshll.u32 %s1479_s12, 4  ;;  %294 = sbr.rel (%p1581_p11) target bundleno = 3270 (0xcc6), region = 52  ;;  %s267_s13 = int_to_ptr.vmem [resolvable:$true] %s266_s13 }
  0x14   : > { %1222 = dma.hbm_to_vmem [thread:$0]  (!%p1220_p13), %s245_s20, 512, %s247_s22, [#allocation9], %s1477_s26, %s1477_s26, %s1478_s10  }
  0x15   : > { %1225 = dma.hbm_to_vmem [thread:$0]  (!%p1220_p13), %s265_s25, 512, %s267_s13, [#allocation12], %s1477_s26, %s1477_s26, %s1478_s10  }
  0x18   : > { %1449 = dma.done.wait (%p1230_p10), [#allocation9], 512  }
  0x19   : > { %1451 = vsyncadd (%p1230_p10), [#allocation9], 4294966784 }
  0x1a   : > { %1453 = dma.done.wait (%p1230_p10), [#allocation12], 512  }
  0x1b   : > { %1455 = vsyncadd (%p1230_p10), [#allocation12], 4294966784  ;;  %s331_s18 = sand.u32 1, %s1466_s28   ;;  %s1175_s19 = sshll.u32 %s1552_s9, 2 }
  0x1c   : > { %s1174_s17 = sshll.u32 %s331_s18, 5  ;;  %p335_p0 = scmp.lt.s32.totalorder %s1175_s19, 7 }
  0x1d   : > { %s1614_s24 = scalar_lea.vmem [#allocation13], %s1174_s17  ;;  %344 = sbr.rel (%p1168_p9) target bundleno = 39 (0x27), region = 64 }
  0x1e   : > { %s1872_s19 = smov (!%p335_p0, %s1175_s19), 7 }
  0x1f   : > { %s1176_s20 = sshll.u32 %s1872_s19, 3 }
  0x20   : > { %s1612_s23 = scalar_lea.vmem %s1853_s0, %s1176_s20 }
  0x22   : > { %vm345_vm0 = vcmask 261120   ;;  %v1480_v0 = vmov 0.0  }
  0x23   : > { %346 = vst.msk [vmem:[#allocation4] sm:$0xff] %vm345_vm0, %v1480_v0 }
  0x24   : > { %347 = vst.msk [vmem:[#allocation5] sm:$0xff] %vm345_vm0, %v1480_v0 }
  0x25   : > { %348 = vst.msk [vmem:[#allocation6] sm:$0xff] %vm345_vm0, %v1480_v0 }
  0x26   : > { %349 = vst.msk [vmem:[#allocation7] sm:$0xff] %vm345_vm0, %v1480_v0 }
  0x27 PF: > { %v1618_v1 = vld [vmem:[#allocation8 + $0x18] sm:$0xff]  ;;  %v355_v2 = vld [vmem:[%s1854_s1 + $0x8] sm:$0xf]  ;;  %vm373_vm1 = vcmask 1043456   ;;  %v1623_v3 = vld [vmem:[#allocation8 + $0x10] sm:$0xff]  ;;  %vm360_vm2 = vcmask 97280   ;;  %v423_v17 = vlaneseq }
  0x28   : > { %449 = vmatpush.msra.mxu1 %v1618_v1  ;;  %1178 = vmatpush.msk.msra.mxu0 %vm373_vm1, %v355_v2  ;;  %v354_v4 = vld [vmem:[%s1854_s1] sm:$0xff]  ;;  %v1630_v6 = vld [vmem:[#allocation8 + $0x8] sm:$0xff]  ;;  %vm433_vm3 = vcmask 261120   ;;  %s1481_s17 = smov 64   ;;  %s1482_s20 = smov 32   ;;  %v421_v40 = vld [vmem:[%s1857_s4 + $0x38] sm:$0xff] }
  0x29   : > { %v350_v5 = vld [vmem:[%s1612_s23] sm:$0xff]  ;;  %599 = vmatpush.msra.mxu3 %v1618_v1  ;;  %v424_v19 = vand.u32 127, %v423_v17  ;;  %v420_v41 = vld [vmem:[%s1857_s4 + $0x30] sm:$0xff]  ;;  %524 = vmatpush.msra.mxu2 %v421_v40  ;;  %v419_v42 = vld [vmem:[%s1857_s4 + $0x28] sm:$0xff]  ;;  %vm512_vm11 = vcmask 523264   ;;  %s1079_s13 = sshll.u32 %s1614_s24, 4  ;;  %s1080_s13 = int_to_ptr.vmem [resolvable:$true] %s1079_s13 }
  0x2a   : > { %450 = vmatpush.msra.mxu1 %v1623_v3  ;;  %392 = vmatpush.msra.mxu0 %v354_v4  ;;  %v1635_v7 = vld [vmem:[#allocation8] sm:$0xff]  ;;  %v417_v47 = vld [vmem:[%s1857_s4 + $0x18] sm:$0xff]  ;;  %v351_v48 = vld [vmem:[%s1612_s23 + $0x8] sm:$0xff]  ;;  %s1067_s21 = scalar_lea.sflag [#allocation10], %s331_s18  ;;  %s1424_s26 = scalar_lea.hbm %s1861_s8, 64 }
  0x2b   : > { %1179 = vmatmul.msk.f32.vlgmr.msra.gmra.mxu0 %vm360_vm2, %v350_v5  ;;  %600 = vmatpush.msra.mxu3 %v1623_v3  ;;  %v428_v8 = vld [vmem:[#allocation4] sm:$0xff]  ;;  %vm425_vm4 = vcmp.ge.s32.totalorder %v424_v19, 64  ;;  %vm426_vm5 = vcmp.lt.s32.totalorder %v424_v19, 96  ;;  %v429_v32 = vld [vmem:[#allocation5] sm:$0xff]  ;;  %v416_v49 = vld [vmem:[%s1857_s4 + $0x10] sm:$0xff] }
  0x2c   : > { %451 = vmatpush.msra.mxu1 %v1630_v6  ;;  %v1646_v9 = vld [vmem:[%s1855_s2] ss:$0 sm:$0xff]  ;;  %vm1649_vm7 = vmand %vm425_vm4, %vm426_vm5  ;;  %941 = vmatpush.msrb.mxu0 %v421_v40  ;;  %v430_v45 = vld [vmem:[#allocation6] sm:$0xff] }
  0x2d   : > { %601 = vmatpush.msra.mxu3 %v1630_v6  ;;  %525 = vmatpush.msra.mxu2 %v420_v41  ;;  %v418_v46 = vld [vmem:[%s1857_s4 + $0x20] sm:$0xff]  ;;  %v415_v50 = vld [vmem:[%s1857_s4 + $0x8] sm:$0xff]  ;;  %v431_v52 = vld [vmem:[#allocation7] sm:$0xff] }
  0x2e   : > { %452 = vmatpush.msra.mxu1 %v1635_v7  ;;  %942 = vmatpush.msrb.mxu0 %v420_v41  ;;  %v414_v51 = vld [vmem:[%s1857_s4] sm:$0xff] }
  0x2f   : > { %1183 = vmatmul.msk.f32.vlgmr.msra.gmra.mxu1 %vm433_vm3, %v428_v8  ;;  %602 = vmatpush.msra.mxu3 %v1635_v7  ;;  %v1702_v61 = vld [vmem:[%s1858_s5] ss:$0 sm:$0xff] }
  0x30   : > { %526 = vmatpush.msra.mxu2 %v419_v42  ;;  %943 = vmatpush.msrb.mxu0 %v419_v42 }
  0x31   : > { %665 = vmatpush.msrb.mxu3 %v421_v40 }
  0x32   : > { %527 = vmatpush.msra.mxu2 %v418_v46  ;;  %944 = vmatpush.msrb.mxu0 %v418_v46 }
  0x33   : > { %666 = vmatpush.msrb.mxu3 %v420_v41  ;;  %1180 = vmatmul.msk.f32.gmra.mxu0 %vm360_vm2, %v351_v48 }
  0x34   : > { %528 = vmatpush.msra.mxu2 %v417_v47  ;;  %945 = vmatpush.msrb.mxu0 %v417_v47 }
  0x35   : > { %667 = vmatpush.msrb.mxu3 %v419_v42 }
  0x36   : > { %529 = vmatpush.msra.mxu2 %v416_v49  ;;  %946 = vmatpush.msrb.mxu0 %v416_v49 }
  0x37   : > { %668 = vmatpush.msrb.mxu3 %v418_v46 }
  0x38   : > { %530 = vmatpush.msra.mxu2 %v415_v50  ;;  %947 = vmatpush.msrb.mxu0 %v415_v50 }
  0x39   : > { %669 = vmatpush.msrb.mxu3 %v417_v47 }
  0x3a   : > { %531 = vmatpush.msra.mxu2 %v414_v51  ;;  %948 = vmatpush.msrb.mxu0 %v414_v51 }
  0x3b   : > { %670 = vmatpush.msrb.mxu3 %v416_v49 }
  0x3c   : > { %803 = vmatpush.msrb.mxu2 %v421_v40 }
  0x3d   : > { %671 = vmatpush.msrb.mxu3 %v415_v50 }
  0x3e   : > { %804 = vmatpush.msrb.mxu2 %v420_v41 }
  0x3f   : > { %672 = vmatpush.msrb.mxu3 %v414_v51 }
  0x40   : > { %805 = vmatpush.msrb.mxu2 %v419_v42 }
  0x42   : > { %806 = vmatpush.msrb.mxu2 %v418_v46 }
  0x44   : > { %807 = vmatpush.msrb.mxu2 %v417_v47 }
  0x46   : > { %808 = vmatpush.msrb.mxu2 %v416_v49 }
  0x48   : > { %809 = vmatpush.msrb.mxu2 %v415_v50 }
  0x4a   : > { %810 = vmatpush.msrb.mxu2 %v414_v51 }
  0xa8   : > { %v394_v10 = vpop.f32.mrf.mxu0 }
  0xa9   : > { %v395_v11 = vadd.f32 %v1646_v9, %v394_v10 }
  0xac   : > { %v454_v12 = vpop.f32.mrf.mxu1 }
  0xad   : > { %v457_v13 = vadd.f32 %v454_v12, %v395_v11 }
  0xaf   : > { %v1184_v14 = vmul.f32 -1.442695, %v457_v13 }
  0xb0   : > { %v397_v56 = vpop.f32.mrf.mxu0 }
  0xb1   : > { %1280 = vpow2.f32 %v1184_v14  ;;  %v398_v57 = vadd.f32 %v1646_v9, %v397_v56 }
  0xb7   : > { %v1281_v15 = vpop.eup %1280 }
  0xb8   : > { %v462_v16 = vadd.f32 1.0, %v1281_v15 }
  0xba   : > { %1282 = vrcp.f32 %v462_v16  ;;  %v474_v22 = vand.u32 2147483648, %v462_v16  ;;  %v472_v24 = vand.u32 2147483647, %v462_v16  ;;  %vm468_vm8 = vweird.f32 %v462_v16 }
  0xbb   : > { %1284 = vtanh.f32 %v457_v13 }
  0xbc   : > { %v475_v27 = vor.u32 1.1754944e-38, %v474_v22  ;;  %vm473_vm10 = vcmp.eq.f32.partialorder %v472_v24, 8.507059e+37 }
  0xc0   : > { %v1283_v18 = vpop.eup %1282 }
  0xc1   : > { %v464_v20 = vmul.f32 %v1283_v18, %v462_v16  ;;  %vm469_vm6 = vweird.f32 %v1283_v18  ;;  %v1285_v29 = vpop.eup %1284 }
  0xc2   : > { %vm470_vm9 = vmor %vm468_vm8, %vm469_vm6 }
  0xc3   : > { %v465_v21 = vsub.f32 1.0, %v464_v20 }
  0xc5   : > { %v466_v23 = vmul.f32 %v1283_v18, %v465_v21 }
  0xc7   : > { %v467_v26 = vadd.f32 %v1283_v18, %v466_v23 }
  0xc9   : > { %v471_v28 = vsel %vm470_vm9, %v1283_v18, %v467_v26 }
  0xca   : > { %v476_v30 = vsel %vm473_vm10, %v475_v27, %v471_v28 }
  0xcb   : > { %v478_v31 = vsel %vm1649_vm7, %v1285_v29, %v476_v30 }
  0xcc   : > { %485 = vrot.lane.b32.xlu0 %v478_v31, %s1481_s17 }
  0xd4   : > { %480 = vrot.lane.b32.xlu0 %v429_v32, %s1482_s20 }
 0x13e   : > { %v486_v33 = vpop.permute.xlu0 %485 }
 0x13f   : > { %v488_v34 = vmul.f32 %v486_v33, %v478_v31 }
 0x141   : > { %490 = vrot.lane.b32.xlu1 %v488_v34, %s1482_s20 }
 0x146   : > { %v481_v35 = vpop.permute.xlu0 %480 }
 0x147   : > { %v483_v36 = vmul.f32 %v481_v35, %v478_v31 }
 0x1b3   : > { %v491_v37 = vpop.permute.xlu1 %490 }
 0x1b4   : > { %v1658_v38 = vadd.f32 %v491_v37, %v483_v36 }
 0x1b6   : > { %1286 = vtanh.f32 %v1658_v38 }
 0x1bc   : > { %v1287_v39 = vpop.eup %1286 }
 0x1bd   : > { %496 = vrot.lane.b32.xlu1 %v1287_v39, %s1481_s17 }
 0x22f   : > { %v497_v43 = vpop.permute.xlu1 %496 }
 0x230   : > { %v499_v44 = vmul.f32 %v497_v43, %v478_v31 }
 0x232   : > { %501 = vrot.lane.b32.xlu2 %v499_v44, %s1482_s20 }
 0x23a   : > { %505 = vrot.lane.b32.xlu2 %v430_v45, %s1482_s20 }
 0x242   : > { %558 = vrot.lane.b32.xlu2 %v431_v52, %s1482_s20  ;;  %v352_v52 = vld [vmem:[%s1612_s23 + $0x10] sm:$0xff] }
 0x243   : > { %1181 = vmatmul.msk.f32.gmra.mxu0 %vm360_vm2, %v352_v52 }
 0x28c   : > { %v502_v53 = vpop.permute.xlu2 %501 }
 0x28d   : > { %1187 = vmatmul.msk.f32.vlgmr.msra.gmra.mxu3 %vm433_vm3, %v502_v53 }
 0x28e   : > { %737 = vmatpush.msra.mxu3 %v1618_v1 }
 0x290   : > { %738 = vmatpush.msra.mxu3 %v1623_v3 }
 0x292   : > { %739 = vmatpush.msra.mxu3 %v1630_v6 }
 0x294   : > { %v506_v54 = vpop.permute.xlu2 %505  ;;  %740 = vmatpush.msra.mxu3 %v1635_v7 }
 0x295   : > { %v508_v55 = vsel %vm433_vm3, %v502_v53, %v506_v54 }
 0x296   : > { %1185 = vmatmul.msk.f32.vlgmr.msra.gmra.mxu2 %vm512_vm11, %v508_v55 }
 0x29c   : > { %v559_v43 = vpop.permute.xlu2 %558 }
 0x310   : > { %v604_v58 = vpop.f32.mrf.mxu3 }
 0x311   : > { %v607_v59 = vadd.f32 %v604_v58, %v398_v57  ;;  %v400_v58 = vpop.f32.mrf.mxu0 }
 0x313   : > { %v1188_v60 = vmul.f32 -1.442695, %v607_v59 }
 0x315   : > { %1288 = vpow2.f32 %v1188_v60  ;;  %v401_v60 = vadd.f32 %v1646_v9, %v400_v58 }
 0x319   : > { %v533_v62 = vpop.f32.mrf.mxu2 }
 0x31a   : > { %v534_v63 = vadd.f32 %v1702_v61, %v533_v62 }
 0x31b   : > { %v1289_v0 = vpop.eup %1288 }
 0x31c   : > { %v612_v2 = vadd.f32 1.0, %v1289_v0  ;;  %v1186_v4 = vmul.f32 -1.442695, %v534_v63 }
 0x31e   : > { %1290 = vrcp.f32 %v612_v2  ;;  %v624_v13 = vand.u32 2147483648, %v612_v2  ;;  %v622_v15 = vand.u32 2147483647, %v612_v2  ;;  %vm618_vm13 = vweird.f32 %v612_v2 }
 0x31f   : > { %1292 = vpow2.f32 %v1186_v4 }
 0x320   : > { %1294 = vtanh.f32 %v607_v59  ;;  %v625_v17 = vor.u32 1.1754944e-38, %v624_v13  ;;  %vm623_vm15 = vcmp.eq.f32.partialorder %v622_v15, 8.507059e+37 }
 0x324   : > { %v1291_v5 = vpop.eup %1290 }
 0x325   : > { %v1293_v8 = vpop.eup %1292  ;;  %v614_v10 = vmul.f32 %v1291_v5, %v612_v2  ;;  %vm619_vm12 = vweird.f32 %v1291_v5 }
 0x326   : > { %v540_v11 = vadd.f32 1.0, %v1293_v8  ;;  %vm620_vm14 = vmor %vm618_vm13, %vm619_vm12  ;;  %v1295_v18 = vpop.eup %1294 }
 0x327   : > { %v615_v12 = vsub.f32 1.0, %v614_v10 }
 0x328   : > { %1296 = vrcp.f32 %v540_v11  ;;  %v552_v26 = vand.u32 2147483648, %v540_v11  ;;  %v550_v28 = vand.u32 2147483647, %v540_v11  ;;  %vm546_vm1 = vweird.f32 %v540_v11 }
 0x329   : > { %v616_v14 = vmul.f32 %v1291_v5, %v615_v12  ;;  %1298 = vtanh.f32 %v534_v63 }
 0x32a   : > { %v553_v30 = vor.u32 1.1754944e-38, %v552_v26  ;;  %vm551_vm5 = vcmp.eq.f32.partialorder %v550_v28, 8.507059e+37 }
 0x32b   : > { %v617_v16 = vadd.f32 %v1291_v5, %v616_v14 }
 0x32d   : > { %v621_v19 = vsel %vm620_vm14, %v1291_v5, %v617_v16 }
 0x32e   : > { %v1297_v20 = vpop.eup %1296  ;;  %v626_v21 = vsel %vm623_vm15, %v625_v17, %v621_v19 }
 0x32f   : > { %v542_v22 = vmul.f32 %v1297_v20, %v540_v11  ;;  %v628_v23 = vsel %vm1649_vm7, %v1295_v18, %v626_v21  ;;  %vm547_vm0 = vweird.f32 %v1297_v20  ;;  %v1299_v32 = vpop.eup %1298 }
 0x330   : > { %631 = vrot.lane.b32.xlu1 %v628_v23, %s1481_s17  ;;  %vm548_vm4 = vmor %vm546_vm1, %vm547_vm0  ;;  %v629_v40 = vmul.f32 %v628_v23, %v1658_v38 }
 0x331   : > { %v543_v24 = vsub.f32 1.0, %v542_v22 }
 0x333   : > { %v544_v27 = vmul.f32 %v1297_v20, %v543_v24 }
 0x335   : > { %v545_v29 = vadd.f32 %v1297_v20, %v544_v27 }
 0x337   : > { %v549_v31 = vsel %vm548_vm4, %v1297_v20, %v545_v29 }
 0x338   : > { %v554_v33 = vsel %vm551_vm5, %v553_v30, %v549_v31 }
 0x339   : > { %v556_v34 = vsel %vm1649_vm7, %v1299_v32, %v554_v33 }
 0x33a   : > { %563 = vrot.lane.b32.xlu0 %v556_v34, %s1481_s17  ;;  %v561_v45 = vmul.f32 %v559_v43, %v556_v34 }
 0x3a2   : > { %v632_v35 = vpop.permute.xlu1 %631 }
 0x3a3   : > { %v634_v36 = vmul.f32 %v632_v35, %v628_v23 }
 0x3a5   : > { %636 = vrot.lane.b32.xlu1 %v634_v36, %s1482_s20 }
 0x3ac   : > { %v564_v37 = vpop.permute.xlu0 %563 }
 0x3ad   : > { %v566_v39 = vmul.f32 %v564_v37, %v556_v34 }
 0x3af   : > { %568 = vrot.lane.b32.xlu0 %v566_v39, %s1482_s20 }
 0x417   : > { %v637_v41 = vpop.permute.xlu1 %636 }
 0x418   : > { %v1714_v42 = vadd.f32 %v637_v41, %v629_v40 }
 0x41a   : > { %1300 = vtanh.f32 %v1714_v42 }
 0x420   : > { %v1301_v44 = vpop.eup %1300 }
 0x421   : > { %v569_v46 = vpop.permute.xlu0 %568  ;;  %642 = vrot.lane.b32.xlu0 %v1301_v44, %s1481_s17 }
 0x422   : > { %v1718_v47 = vadd.f32 %v569_v46, %v561_v45 }
 0x424   : > { %1302 = vtanh.f32 %v1718_v47 }
 0x42a   : > { %v1303_v48 = vpop.eup %1302 }
 0x42b   : > { %574 = vrot.lane.b32.xlu2 %v1303_v48, %s1481_s17 }
 0x485   : > { %v575_v38 = vpop.permute.xlu2 %574 }
 0x486   : > { %v1722_v49 = vmul.f32 %v575_v38, %v556_v34  ;;  %v353_v38 = vld [vmem:[%s1612_s23 + $0x18] sm:$0xff]  ;;  %s1483_s23 = smov 96  }
 0x487   : > { %1182 = vmatmul.msk.f32.gmra.mxu0 %vm360_vm2, %v353_v38 }
 0x488   : > { %650 = vrot.lane.b32.xlu2 %v1722_v49, %s1481_s17 }
 0x493   : > { %v643_v50 = vpop.permute.xlu0 %642 }
 0x494   : > { %v645_v51 = vmul.f32 %v643_v50, %v628_v23 }
 0x496   : > { %647 = vrot.lane.b32.xlu1 %v645_v51, %s1482_s20 }
 0x4e2   : > { %v651_v53 = vpop.permute.xlu2 %650 }
 0x504   : > { %v403_v52 = vpop.f32.mrf.mxu0 }
 0x508   : > { %v648_v54 = vpop.permute.xlu1 %647 }
 0x509   : > { %v653_v55 = vsel %vm433_vm3, %v648_v54, %v651_v53  ;;  %v404_v53 = vadd.f32 %v1646_v9, %v403_v52 }
 0x50a   : > { %1189 = vmatmul.msk.f32.vlgmr.msrb.gmra.mxu3 %vm512_vm11, %v653_v55 }
 0x50b   : > { %875 = vmatpush.msrb.mxu3 %v1618_v1 }
 0x50d   : > { %876 = vmatpush.msrb.mxu3 %v1623_v3 }
 0x50f   : > { %877 = vmatpush.msrb.mxu3 %v1630_v6 }
 0x511   : > { %878 = vmatpush.msrb.mxu3 %v1635_v7 }
 0x512   : > { %1191 = vmatmul.msk.f32.vlgmr.msra.gmra.mxu3 %vm433_vm3, %v648_v54 }
 0x58d   : > { %v674_v56 = vpop.f32.mrf.mxu3 }
 0x58e   : > { %v675_v57 = vadd.f32 %v1702_v61, %v674_v56 }
 0x590   : > { %v1190_v59 = vmul.f32 -1.442695, %v675_v57 }
 0x592   : > { %1304 = vpow2.f32 %v1190_v59 }
 0x595   : > { %v742_v62 = vpop.f32.mrf.mxu3 }
 0x596   : > { %v745_v63 = vadd.f32 %v742_v62, %v401_v60 }
 0x598   : > { %v1305_v0 = vpop.eup %1304  ;;  %v1192_v1 = vmul.f32 -1.442695, %v745_v63 }
 0x599   : > { %v681_v2 = vadd.f32 1.0, %v1305_v0 }
 0x59a   : > { %1306 = vpow2.f32 %v1192_v1 }
 0x59b   : > { %1308 = vrcp.f32 %v681_v2  ;;  %v693_v8 = vand.u32 2147483648, %v681_v2  ;;  %v691_v11 = vand.u32 2147483647, %v681_v2  ;;  %vm687_vm8 = vweird.f32 %v681_v2 }
 0x59d   : > { %v694_v14 = vor.u32 1.1754944e-38, %v693_v8  ;;  %vm692_vm10 = vcmp.eq.f32.partialorder %v691_v11, 8.507059e+37 }
 0x5a0   : > { %v1307_v3 = vpop.eup %1306 }
 0x5a1   : > { %v1309_v6 = vpop.eup %1308  ;;  %v750_v7 = vadd.f32 1.0, %v1307_v3 }
 0x5a2   : > { %v683_v4 = vmul.f32 %v1309_v6, %v681_v2  ;;  %vm688_vm6 = vweird.f32 %v1309_v6 }
 0x5a3   : > { %1310 = vrcp.f32 %v750_v7  ;;  %vm689_vm9 = vmor %vm687_vm8, %vm688_vm6  ;;  %v762_v21 = vand.u32 2147483648, %v750_v7  ;;  %v760_v23 = vand.u32 2147483647, %v750_v7  ;;  %vm756_vm13 = vweird.f32 %v750_v7 }
 0x5a4   : > { %v684_v5 = vsub.f32 1.0, %v683_v4  ;;  %1312 = vtanh.f32 %v675_v57 }
 0x5a5   : > { %1314 = vtanh.f32 %v745_v63  ;;  %v763_v26 = vor.u32 1.1754944e-38, %v762_v21  ;;  %vm761_vm15 = vcmp.eq.f32.partialorder %v760_v23, 8.507059e+37 }
 0x5a6   : > { %v685_v10 = vmul.f32 %v1309_v6, %v684_v5 }
 0x5a8   : > { %v686_v12 = vadd.f32 %v1309_v6, %v685_v10 }
 0x5a9   : > { %v1311_v13 = vpop.eup %1310 }
 0x5aa   : > { %v690_v15 = vsel %vm689_vm9, %v1309_v6, %v686_v12  ;;  %v752_v16 = vmul.f32 %v1311_v13, %v750_v7  ;;  %v1313_v17 = vpop.eup %1312  ;;  %vm757_vm12 = vweird.f32 %v1311_v13 }
 0x5ab   : > { %v695_v18 = vsel %vm692_vm10, %v694_v14, %v690_v15  ;;  %vm758_vm14 = vmor %vm756_vm13, %vm757_vm12  ;;  %v1315_v28 = vpop.eup %1314 }
 0x5ac   : > { %v697_v19 = vsel %vm1649_vm7, %v1313_v17, %v695_v18  ;;  %v753_v20 = vsub.f32 1.0, %v752_v16 }
 0x5ad   : > { %700 = vrot.lane.b32.xlu0 %v697_v19, %s1481_s17  ;;  %v698_v35 = vmul.f32 %v697_v19, %v1718_v47 }
 0x5ae   : > { %v754_v22 = vmul.f32 %v1311_v13, %v753_v20 }
 0x5b0   : > { %v755_v24 = vadd.f32 %v1311_v13, %v754_v22 }
 0x5b2   : > { %v759_v27 = vsel %vm758_vm14, %v1311_v13, %v755_v24 }
 0x5b3   : > { %v764_v29 = vsel %vm761_vm15, %v763_v26, %v759_v27 }
 0x5b4   : > { %v766_v30 = vsel %vm1649_vm7, %v1315_v28, %v764_v29 }
 0x5b5   : > { %769 = vrot.lane.b32.xlu1 %v766_v30, %s1481_s17  ;;  %v767_v40 = vmul.f32 %v766_v30, %v1714_v42 }
 0x61f   : > { %v701_v31 = vpop.permute.xlu0 %700 }
 0x620   : > { %v703_v32 = vmul.f32 %v701_v31, %v697_v19 }
 0x622   : > { %705 = vrot.lane.b32.xlu2 %v703_v32, %s1482_s20 }
 0x627   : > { %v770_v33 = vpop.permute.xlu1 %769 }
 0x628   : > { %v772_v34 = vmul.f32 %v770_v33, %v766_v30 }
 0x62a   : > { %774 = vrot.lane.b32.xlu0 %v772_v34, %s1482_s20 }
 0x67c   : > { %v706_v36 = vpop.permute.xlu2 %705 }
 0x67d   : > { %v1747_v37 = vadd.f32 %v706_v36, %v698_v35 }
 0x67f   : > { %1316 = vtanh.f32 %v1747_v37 }
 0x685   : > { %v1317_v39 = vpop.eup %1316 }
 0x686   : > { %711 = vrot.lane.b32.xlu1 %v1317_v39, %s1481_s17 }
 0x69c   : > { %v775_v41 = vpop.permute.xlu0 %774 }
 0x69d   : > { %v1752_v43 = vadd.f32 %v775_v41, %v767_v40 }
 0x69f   : > { %1318 = vtanh.f32 %v1752_v43 }
 0x6a5   : > { %v1319_v44 = vpop.eup %1318 }
 0x6a6   : > { %780 = vrot.lane.b32.xlu2 %v1319_v44, %s1481_s17 }
 0x6f8   : > { %v712_v45 = vpop.permute.xlu1 %711 }
 0x6f9   : > { %v1756_v46 = vmul.f32 %v712_v45, %v697_v19 }
 0x6fb   : > { %788 = vrot.lane.b32.xlu1 %v1756_v46, %s1481_s17 }
 0x700   : > { %v781_v47 = vpop.permute.xlu2 %780 }
 0x701   : > { %v783_v48 = vmul.f32 %v781_v47, %v766_v30 }
 0x703   : > { %785 = vrot.lane.b32.xlu0 %v783_v48, %s1482_s20 }
 0x76d   : > { %v789_v42 = vpop.permute.xlu1 %788 }
 0x775   : > { %v786_v50 = vpop.permute.xlu0 %785 }
 0x776   : > { %v791_v51 = vsel %vm433_vm3, %v786_v50, %v789_v42  ;;  %1195 = vmatmul.msk.f32.vlgmr.msrb.gmra.mxu3 %vm433_vm3, %v786_v50 }
 0x777   : > { %1193 = vmatmul.msk.f32.vlgmr.msrb.gmra.mxu2 %vm512_vm11, %v791_v51 }
 0x7f9   : > { %v880_v54 = vpop.f32.mrf.mxu3 }
 0x7fa   : > { %v883_v55 = vadd.f32 %v880_v54, %v404_v53  ;;  %v812_v56 = vpop.f32.mrf.mxu2 }
 0x7fb   : > { %v813_v57 = vadd.f32 %v1702_v61, %v812_v56 }
 0x7fc   : > { %v1196_v58 = vmul.f32 -1.442695, %v883_v55 }
 0x7fd   : > { %v1194_v59 = vmul.f32 -1.442695, %v813_v57 }
 0x7fe   : > { %1320 = vpow2.f32 %v1196_v58 }
 0x7ff   : > { %1322 = vpow2.f32 %v1194_v59 }
 0x804   : > { %v1321_v60 = vpop.eup %1320 }
 0x805   : > { %v1323_v62 = vpop.eup %1322  ;;  %v888_v63 = vadd.f32 1.0, %v1321_v60 }
 0x806   : > { %v819_v0 = vadd.f32 1.0, %v1323_v62 }
 0x807   : > { %1324 = vrcp.f32 %v888_v63  ;;  %v900_v7 = vand.u32 2147483648, %v888_v63  ;;  %v898_v8 = vand.u32 2147483647, %v888_v63  ;;  %vm894_vm1 = vweird.f32 %v888_v63 }
 0x808   : > { %1326 = vrcp.f32 %v819_v0  ;;  %v831_v10 = vand.u32 2147483648, %v819_v0  ;;  %v829_v12 = vand.u32 2147483647, %v819_v0  ;;  %vm825_vm5 = vweird.f32 %v819_v0 }
 0x809   : > { %1328 = vtanh.f32 %v883_v55  ;;  %v901_v14 = vor.u32 1.1754944e-38, %v900_v7  ;;  %vm899_vm6 = vcmp.eq.f32.partialorder %v898_v8, 8.507059e+37 }
 0x80a   : > { %1330 = vtanh.f32 %v813_v57  ;;  %v832_v18 = vor.u32 1.1754944e-38, %v831_v10  ;;  %vm830_vm9 = vcmp.eq.f32.partialorder %v829_v12, 8.507059e+37 }
 0x80d   : > { %v1325_v1 = vpop.eup %1324 }
 0x80e   : > { %v1327_v2 = vpop.eup %1326  ;;  %v890_v3 = vmul.f32 %v1325_v1, %v888_v63  ;;  %vm895_vm2 = vweird.f32 %v1325_v1 }
 0x80f   : > { %v821_v6 = vmul.f32 %v1327_v2, %v819_v0  ;;  %vm826_vm0 = vweird.f32 %v1327_v2  ;;  %vm896_vm4 = vmor %vm894_vm1, %vm895_vm2  ;;  %v1329_v16 = vpop.eup %1328  ;;  %v1016_v0 = vld [vmem:[#allocation11 + $0x18] sm:$0xff] }
 0x810   : > { %v891_v9 = vsub.f32 1.0, %v890_v3  ;;  %vm827_vm8 = vmor %vm825_vm5, %vm826_vm0  ;;  %v1331_v19 = vpop.eup %1330  ;;  %1045 = vmatpush.msrb.mxu1 %v1016_v0  ;;  %v1013_v3 = vld [vmem:[#allocation11] sm:$0xff] }
 0x811   : > { %v822_v4 = vsub.f32 1.0, %v821_v6 }
 0x812   : > { %v892_v5 = vmul.f32 %v1325_v1, %v891_v9 }
 0x813   : > { %v823_v11 = vmul.f32 %v1327_v2, %v822_v4 }
 0x814   : > { %v893_v13 = vadd.f32 %v1325_v1, %v892_v5 }
 0x815   : > { %v824_v15 = vadd.f32 %v1327_v2, %v823_v11 }
 0x816   : > { %v897_v17 = vsel %vm896_vm4, %v1325_v1, %v893_v13  ;;  %v1015_v1 = vld [vmem:[#allocation11 + $0x10] sm:$0xff] }
 0x817   : > { %v902_v20 = vsel %vm899_vm6, %v901_v14, %v897_v17  ;;  %v828_v21 = vsel %vm827_vm8, %v1327_v2, %v824_v15  ;;  %v1014_v2 = vld [vmem:[#allocation11 + $0x8] sm:$0xff]  ;;  %1046 = vmatpush.msrb.mxu1 %v1015_v1 }
 0x818   : > { %v904_v22 = vsel %vm1649_vm7, %v1329_v16, %v902_v20  ;;  %v833_v23 = vsel %vm830_vm9, %v832_v18, %v828_v21 }
 0x819   : > { %907 = vrot.lane.b32.xlu0 %v904_v22, %s1481_s17  ;;  %v835_v24 = vsel %vm1649_vm7, %v1331_v19, %v833_v23  ;;  %v905_v30 = vmul.f32 %v904_v22, %v1752_v43  ;;  %1047 = vmatpush.msrb.mxu1 %v1014_v2 }
 0x81a   : > { %838 = vrot.lane.b32.xlu2 %v835_v24, %s1481_s17  ;;  %v836_v32 = vmul.f32 %v835_v24, %v1747_v37 }
 0x81b   : > { %1048 = vmatpush.msrb.mxu1 %v1013_v3 }
 0x874   : > { %v839_v26 = vpop.permute.xlu2 %838 }
 0x875   : > { %v841_v27 = vmul.f32 %v839_v26, %v835_v24 }
 0x877   : > { %843 = vrot.lane.b32.xlu1 %v841_v27, %s1482_s20 }
 0x88b   : > { %v908_v28 = vpop.permute.xlu0 %907 }
 0x88c   : > { %v910_v29 = vmul.f32 %v908_v28, %v904_v22 }
 0x88e   : > { %912 = vrot.lane.b32.xlu2 %v910_v29, %s1482_s20 }
 0x8e8   : > { %v913_v31 = vpop.permute.xlu2 %912 }
 0x8e9   : > { %v915_v33 = vadd.f32 %v913_v31, %v905_v30  ;;  %v844_v34 = vpop.permute.xlu1 %843 }
 0x8ea   : > { %v846_v35 = vadd.f32 %v844_v34, %v836_v32 }
 0x8eb   : > { %1332 = vtanh.f32 %v915_v33 }
 0x8ec   : > { %1334 = vtanh.f32 %v846_v35 }
 0x8f1   : > { %v1333_v36 = vpop.eup %1332 }
 0x8f2   : > { %v1335_v39 = vpop.eup %1334  ;;  %918 = vrot.lane.b32.xlu1 %v1333_v36, %s1481_s17 }
 0x8f3   : > { %849 = vrot.lane.b32.xlu0 %v1335_v39, %s1481_s17 }
 0x964   : > { %v919_v40 = vpop.permute.xlu1 %918 }
 0x965   : > { %v921_v41 = vmul.f32 %v919_v40, %v904_v22  ;;  %v850_v44 = vpop.permute.xlu0 %849 }
 0x966   : > { %v1780_v45 = vmul.f32 %v850_v44, %v835_v24 }
 0x967   : > { %923 = vrot.lane.b32.xlu2 %v921_v41, %s1482_s20 }
 0x968   : > { %926 = vrot.lane.b32.xlu0 %v1780_v45, %s1481_s17 }
 0x9c1   : > { %v924_v37 = vpop.permute.xlu2 %923 }
 0x9c2   : > { %997 = vst.msk [vmem:[#allocation4] sm:$0xff] %vm433_vm3, %v924_v37 }
 0x9da   : > { %v927_v43 = vpop.permute.xlu0 %926 }
 0x9db   : > { %v929_v47 = vsel %vm433_vm3, %v924_v37, %v927_v43 }
 0x9dc   : > { %1197 = vmatmul.msk.f32.vlgmr.msrb.gmra.mxu0 %vm512_vm11, %v929_v47 }
 0xa59   : > { %v950_v48 = vpop.f32.mrf.mxu0 }
 0xa5a   : > { %v951_v38 = vadd.f32 %v1702_v61, %v950_v48 }
 0xa5c   : > { %v1198_v42 = vmul.f32 -1.442695, %v951_v38 }
 0xa5e   : > { %1336 = vpow2.f32 %v1198_v42 }
 0xa64   : > { %v1337_v50 = vpop.eup %1336 }
 0xa65   : > { %v957_v51 = vadd.f32 1.0, %v1337_v50 }
 0xa67   : > { %1338 = vrcp.f32 %v957_v51  ;;  %v969_v55 = vand.u32 2147483648, %v957_v51  ;;  %v967_v57 = vand.u32 2147483647, %v957_v51  ;;  %vm963_vm12 = vweird.f32 %v957_v51 }
 0xa68   : > { %1340 = vtanh.f32 %v951_v38 }
 0xa69   : > { %v970_v59 = vor.u32 1.1754944e-38, %v969_v55  ;;  %vm968_vm11 = vcmp.eq.f32.partialorder %v967_v57, 8.507059e+37 }
 0xa6d   : > { %v1339_v52 = vpop.eup %1338 }
 0xa6e   : > { %v959_v53 = vmul.f32 %v1339_v52, %v957_v51  ;;  %vm964_vm10 = vweird.f32 %v1339_v52  ;;  %v1341_v61 = vpop.eup %1340 }
 0xa6f   : > { %vm965_vm13 = vmor %vm963_vm12, %vm964_vm10 }
 0xa70   : > { %v960_v54 = vsub.f32 1.0, %v959_v53 }
 0xa72   : > { %v961_v56 = vmul.f32 %v1339_v52, %v960_v54 }
 0xa74   : > { %v962_v58 = vadd.f32 %v1339_v52, %v961_v56 }
 0xa76   : > { %v966_v60 = vsel %vm965_vm13, %v1339_v52, %v962_v58 }
 0xa77   : > { %v971_v62 = vsel %vm968_vm11, %v970_v59, %v966_v60 }
 0xa78   : > { %v973_v63 = vsel %vm1649_vm7, %v1341_v61, %v971_v62 }
 0xa79   : > { %976 = vrot.lane.b32.xlu1 %v973_v63, %s1481_s17 }
 0xa81   : > { %579 = vrot.lane.b32.xlu1 %v1722_v49, %s1482_s20  ;;  %v974_v49 = vmul.f32 %v973_v63, %v846_v35 }
 0xaeb   : > { %v977_v6 = vpop.permute.xlu1 %976 }
 0xaec   : > { %v979_v9 = vmul.f32 %v977_v6, %v973_v63 }
 0xaee   : > { %981 = vrot.lane.b32.xlu2 %v979_v9, %s1482_s20 }
 0xaf3   : > { %v580_v7 = vpop.permute.xlu1 %579 }
 0xaf4   : > { %582 = vst.msk [vmem:[#allocation3] sm:$0xff] %vm433_vm3, %v580_v7 }
 0xaf6   : > { %716 = vrot.lane.b32.xlu2 %v1756_v46, %s1482_s20  ;;  %v1279_v46 = vld [vmem:[%s1860_s7] ss:$0 sm:$0xff] }
 0xafb   : > { %v1009_v25 = vld [vmem:[#allocation3] sm:$0xff] }
 0xafc   : > { %1199 = vmatmul.msk.f32.vlgmr.msrb.gmra.mxu1 %vm433_vm3, %v1009_v25 }
 0xafe   : > { %999 = vrot.lane.b32.xlu2 %v915_v33, %s1483_s23 }
 0xb48   : > { %v982_v4 = vpop.permute.xlu2 %981 }
 0xb49   : > { %v984_v5 = vadd.f32 %v982_v4, %v974_v49 }
 0xb4b   : > { %1342 = vtanh.f32 %v984_v5 }
 0xb50   : > { %v717_v8 = vpop.permute.xlu2 %716 }
 0xb51   : > { %v1343_v10 = vpop.eup %1342  ;;  %720 = vst.msk [vmem:[#allocation3 + $0x8] sm:$0xff] %vm433_vm3, %v717_v8 }
 0xb52   : > { %987 = vrot.lane.b32.xlu0 %v1343_v10, %s1481_s17  ;;  %s1208_s17 = sshll.u32 %s1552_s9, 5 }
 0xb53   : > { %s1078_s12 = scalar_lea.hbm %s1861_s8, %s1208_s17 }
 0xb54   : > { %s1081_s19 = sshll.u32 %s1078_s12, 4  ;;  %s1082_s19 = int_to_ptr.hbm [resolvable:$true] %s1081_s19 }
 0xb55   : > { %s1418_s22 = sshra.s32 %s1082_s19, 4  ;;  %s1419_s22 = int_to_ptr.hbm [resolvable:$true] %s1418_s22 }
 0xb56   : > { %p1425_p4 = scmp.lt.s32.totalorder %s1419_s22, %s1861_s8 }
 0xb58   : > { %v1000_v11 = vpop.permute.xlu2 %999  ;;  %v1010_v12 = vld [vmem:[#allocation3 + $0x8] sm:$0xff] }
 0xb59   : > { %1002 = vst.msk [vmem:[#allocation5] sm:$0xff] %vm433_vm3, %v1000_v11  ;;  %1200 = vmatmul.msk.f32.gmra.mxu1 %vm433_vm3, %v1010_v12 }
 0xb5a   : > { %854 = vrot.lane.b32.xlu0 %v1780_v45, %s1482_s20 }
 0xb62   : > { %1005 = vrot.lane.b32.xlu0 %v984_v5, %s1483_s23  ;;  %s1420_s23 = scalar_lea.hbm %s1419_s22, 32 }
 0xb63   : > { %p1421_p1 = scmp.ne.s32.totalorder %s1419_s22, %s1420_s23  ;;  %p1426_p7 = scmp.lt.s32.totalorder %s1424_s26, %s1420_s23 }
 0xb65   : > { %p1422_p2 = pnand %p1421_p1, %p1569_p5  ;;  %p1427_p8 = por %p1426_p7, %p1425_p4 }
 0xb67   : > { %p1423_p3 = pneg %p1422_p2 }
 0xb69   : > { %p1428_p9 = pnand %p1427_p8, %p1423_p3 }
 0xb79   : > { %v1050_v13 = vpop.f32.mrf.mxu1 }
 0xb7a   : > { %v1051_v14 = vadd.f32 %v1279_v46, %v1050_v13 }
 0xb7c   : > { %1062 = vst [vmem:[%s1614_s24] sm:$0xff] %v1051_v14 }
 0xbc4   : > { %v988_v15 = vpop.permute.xlu0 %987 }
 0xbc5   : > { %v990_v16 = vmul.f32 %v988_v15, %v973_v63 }
 0xbc7   : > { %992 = vrot.lane.b32.xlu1 %v990_v16, %s1482_s20 }
 0xbcc   : > { %v855_v17 = vpop.permute.xlu0 %854 }
 0xbcd   : > { %858 = vst.msk [vmem:[#allocation3 + $0x10] sm:$0xff] %vm433_vm3, %v855_v17 }
 0xbd4   : > { %v1006_v18 = vpop.permute.xlu0 %1005  ;;  %v1011_v19 = vld [vmem:[#allocation3 + $0x10] sm:$0xff] }
 0xbd5   : > { %1008 = vst.msk [vmem:[#allocation7] sm:$0xff] %vm433_vm3, %v1006_v18  ;;  %1201 = vmatmul.msk.f32.gmra.mxu1 %vm433_vm3, %v1011_v19 }
 0xbd6   : > { %v1053_v20 = vpop.f32.mrf.mxu1 }
 0xbd7   : > { %v1054_v21 = vadd.f32 %v1279_v46, %v1053_v20 }
 0xbd9   : > { %1063 = vst [vmem:[%s1614_s24 + $0x8] sm:$0xff] %v1054_v21 }
 0xc39   : > { %v993_v22 = vpop.permute.xlu1 %992 }
 0xc3a   : > { %996 = vst.msk [vmem:[#allocation3 + $0x18] sm:$0xff] %vm433_vm3, %v993_v22 }
 0xc3b   : > { %1003 = vst.msk [vmem:[#allocation6] sm:$0xff] %vm433_vm3, %v993_v22 }
 0xc41   : > { %v1012_v23 = vld [vmem:[#allocation3 + $0x18] sm:$0xff] }
 0xc42   : > { %1202 = vmatmul.msk.f32.gmra.mxu1 %vm433_vm3, %v1012_v23 }
 0xc52   : > { %v1056_v24 = vpop.f32.mrf.mxu1 }
 0xc53   : > { %v1057_v26 = vadd.f32 %v1279_v46, %v1056_v24 }
 0xc55   : > { %1064 = vst [vmem:[%s1614_s24 + $0x10] sm:$0xff] %v1057_v26 }
 0xcbf   : > { %v1059_v27 = vpop.f32.mrf.mxu1 }
 0xcc0   : > { %v1060_v28 = vadd.f32 %v1279_v46, %v1059_v27 }
 0xcc2   : > { %1065 = vst [vmem:[%s1614_s24 + $0x18] sm:$0xff] %v1060_v28 }
 0xcc3   : > { %1431 = shalt.err (!%p1428_p9)
}
 0xcc4   : > { %s1484_s18 = smov 128   ;;  %s1485_s24 = smov 8  }
 0xcc5   : > { %1217 = dma.vmem_to_hbm [thread:$0]  (%p1569_p5), %s1080_s13, 512, %s1082_s19, %s1067_s21, %s1484_s18, %s1484_s18, %s1485_s24  }
 0xcc6 PF: > { %p1234_p10 = scmp.ge.s32.totalorder %s1474_s30, 2  ;;  %s1096_s10 = sand.u32 1, %s1462_s27  }
 0xcc7   : > { %s1097_s12 = scalar_lea.sflag [#allocation10], %s1096_s10 }
 0xcc8   : > { %p1227_p11 = pnand %p1234_p10, %p1573_p6 }
 0xcca   : > { %p1228_p12 = pneg %p1227_p11 }
 0xccc   : > { %1457 = dma.done.wait (%p1228_p12), %s1097_s12, 512  }
 0xccd   : > { %1459 = vsyncadd (%p1228_p12), %s1097_s12, 4294966784  ;;  %p20_p13 = scmp.ge.s32.totalorder %s1556_s11, 4   ;;  %s1867_s27 = smov %s1466_s28 }
 0xcce   : > { %s1868_s28 = smov %s1470_s29  ;;  %s1869_s29 = smov %s1567_s14 }
 0xccf   : > { %s1870_s30 = smov %s1556_s11  ;;  %22 = sbr.rel (!%p20_p13) target bundleno = 5 (0x5), region = 106 }
 0xcd4   :  { %1103 = vsyncpa [#allocation9], 1 }
 0xcd5   :  { %1105 = vsyncpa [#allocation9 + $0x1], 1 }
 0xcd6   :  { %1106 = vsyncpa [#allocation12], 1 }
 0xcd7   :  { %1107 = vsyncpa [#allocation10], 1 }
 0xcd8   :  { %1109 = vsyncpa [#allocation10 + $0x1], 1 }

</bundles_post_ra>
